<compile_context>
chip_gen: v6e
topology: v6e:2x2x1
jax: 0.10.0
libtpu: 0.0.40
codegen_flags: <defaults>
</compile_context>

<pallas_src>
import functools

import jax
import jax.numpy as jnp
from jax.experimental import pallas as pl
from jax.experimental.pallas import tpu as pltpu


def transformer_kernel(x_ref, pe_ref, emb_w_ref, emb_b_ref,
                       w_in_ref, b_in_ref, w_out_ref, b_out_ref,
                       w_ff1_ref, b_ff1_ref, w_ff2_ref, b_ff2_ref,
                       ln1_g_ref, ln1_b_ref, ln2_g_ref, ln2_b_ref,
                       out_ref, *, num_layers, num_heads, seq_len, matmul_dtype):
    TBS, F = x_ref.shape
    S = seq_len
    TB = TBS // S
    H = emb_w_ref.shape[1]
    hd = H // num_heads
    scale = 1.0 / float(hd) ** 0.5
    mm = matmul_dtype

    def layer_norm(z, g, b):                      # f32 elementwise math
        mu = jnp.mean(z, axis=-1, keepdims=True)
        var = jnp.mean(jnp.square(z - mu), axis=-1, keepdims=True)
        return (z - mu) * jax.lax.rsqrt(var + 1e-5) * g + b

    # ---- embedding + positional encoding (2-D: PE pre-tiled to (TB*S, H)) -------
    h = jnp.dot(x_ref[...].astype(mm), emb_w_ref[...],
                preferred_element_type=jnp.float32) + emb_b_ref[...]
    h = h + pe_ref[...]                                            # (TBS, H) f32

    # ---- transformer encoder layers (post-norm, relu) ----------------------------
    # TODO(synk): dropout(p=0.1) inside each encoder layer is train-only; eval-mode
    # forward is implemented (dropout == identity).
    # NOTE: static unroll is fine at small depth; switch to lax.fori_loop over the
    # stacked-weight leading axis for deep configurations.
    for li in range(num_layers):
        # --- fused QKV projection (one matmul, bf16 operands, f32 accumulate) ---
        qkv = jnp.dot(h.astype(mm), w_in_ref[li],
                      preferred_element_type=jnp.float32) + b_in_ref[li]   # (TBS, 3H)

        # Fold heads into the leading batch axis: (num_heads*TB, S, hd).
        qh = jnp.concatenate(
            [(qkv[:, i * hd:(i + 1) * hd] * scale).reshape(TB, S, hd)
             for i in range(num_heads)], axis=0).astype(mm)
        kh = jnp.concatenate(
            [qkv[:, H + i * hd:H + (i + 1) * hd].reshape(TB, S, hd)
             for i in range(num_heads)], axis=0).astype(mm)
        vh = jnp.concatenate(
            [qkv[:, 2 * H + i * hd:2 * H + (i + 1) * hd].reshape(TB, S, hd)
             for i in range(num_heads)], axis=0).astype(mm)

        # One scores einsum, one softmax, one PV einsum over all heads.
        s = jnp.einsum('bqd,bkd->bqk', qh, kh,
                       preferred_element_type=jnp.float32)          # (nh*TB, S, S)
        s = s - jnp.max(s, axis=-1, keepdims=True)
        p = jnp.exp(s)                                              # unnormalized
        l = jnp.sum(p, axis=-1, keepdims=True)
        o = jnp.einsum('bqk,bkd->bqd', p.astype(mm), vh,
                       preferred_element_type=jnp.float32)          # (nh*TB, S, hd)
        # Deferred softmax normalization (exact reciprocal; approx=True would be
        # cheaper but may break the tight numeric check).
        o = o * pl.reciprocal(l, approx=False)

        # Re-concatenate heads on the feature axis -> ONE (TBS,H)@(H,H) projection.
        attn = jnp.concatenate([o[i * TB:(i + 1) * TB] for i in range(num_heads)],
                               axis=-1).reshape(TBS, H)
        attn = jnp.dot(attn.astype(mm), w_out_ref[li],
                       preferred_element_type=jnp.float32) + b_out_ref[li]
        h = layer_norm(h + attn, ln1_g_ref[li], ln1_b_ref[li])

        # --- feed-forward ---
        ff = jnp.dot(h.astype(mm), w_ff1_ref[li],
                     preferred_element_type=jnp.float32) + b_ff1_ref[li]
        ff = jnp.maximum(ff, 0.0)
        ff = jnp.dot(ff.astype(mm), w_ff2_ref[li],
                     preferred_element_type=jnp.float32) + b_ff2_ref[li]
        h = layer_norm(h + ff, ln2_g_ref[li], ln2_b_ref[li])

    # ---- mean pool over sequence; (H, out_dim) head is done in XLA outside ------
    out_ref[...] = jnp.mean(h.reshape(TB, S, H), axis=1).astype(out_ref.dtype)


def _resident_spec(arr):
    """Full-array VMEM-resident block: same block for every batch tile.
    NOTE: for scaled-up models stream per-layer weight slabs (layer grid axis or
    manual double-buffered DMA) instead of keeping all layers resident -- v7x only
    has 64 MiB of VMEM."""
    n = arr.ndim
    return pl.BlockSpec(arr.shape, lambda b, n=n: (0,) * n)


def transformer_classifier_forward(x, params, *, num_heads, num_layers,
                                   batch_tile=64, matmul_dtype=jnp.bfloat16):
    """TransformerClassifier forward; encoder runs in one Pallas kernel gridded
    over batch tiles, the tiny classification head runs in XLA (lane-dense out).

    x: (B, S, F) float32 with S == F == num_inputs. Returns (B, output_dim) f32.
    """
    B, S, F = x.shape
    H = params["emb_w"].shape[1]
    mm = matmul_dtype

    # --- batch tiling: >=2 grid steps when possible (v7x 2 TCs), minimal padding ---
    TB = max(1, min(batch_tile, B))
    if B >= 2:
        TB = min(TB, pl.cdiv(B, 2))
    G = pl.cdiv(B, TB)
    Bp = G * TB
    if Bp != B:
        x = jnp.pad(x, ((0, Bp - B), (0, 0), (0, 0)))

    # Pre-flatten per-tile to 2-D and pre-tile the positional encoding so the
    # in-kernel residual stream never needs (TBS,H)<->(TB,S,H) relayouts.
    x_tiles = x.reshape(G, TB * S, F).astype(mm)
    pe_tiled = jnp.tile(params["pos_enc"].reshape(S, H), (TB, 1)).astype(jnp.float32)

    # Matmul weights stored in the MXU dtype; biases / LN params stay f32.
    wlist = [
        pe_tiled,
        params["emb_w"].astype(mm), params["emb_b"],
        params["w_in"].astype(mm), params["b_in"],
        params["w_out"].astype(mm), params["b_out"],
        params["w_ff1"].astype(mm), params["b_ff1"],
        params["w_ff2"].astype(mm), params["b_ff2"],
        params["ln1_g"], params["ln1_b"], params["ln2_g"], params["ln2_b"],
    ]

    kernel = functools.partial(transformer_kernel, num_layers=num_layers,
                               num_heads=num_heads, seq_len=S, matmul_dtype=mm)

    in_specs = ([pl.BlockSpec((None, TB * S, F), lambda b: (b, 0, 0))]
                + [_resident_spec(w) for w in wlist])

    pooled = pl.pallas_call(
        kernel,
        out_shape=jax.ShapeDtypeStruct((G, TB, H), jnp.float32),
        grid=(G,),
        in_specs=in_specs,
        out_specs=pl.BlockSpec((None, TB, H), lambda b: (b, 0, 0)),
        compiler_params=pltpu.CompilerParams(
            dimension_semantics=("parallel",),
            vmem_limit_bytes=32 * 1024 * 1024),
    )(x_tiles, *wlist)

    pooled = pooled.reshape(Bp, H)[:B]
    # Classification head (H -> out_dim=1) in plain XLA: keeps the kernel's output
    # lane-dense instead of forcing a 1-wide masked store / degenerate MXU op.
    return pooled @ params["fc_w"] + params["fc_b"]


def init_params(key, num_inputs, hidden_dim, num_heads=2, num_layers=2, output_dim=1):
    """Deterministic init: uniform(-1/sqrt(fan_in)) linears, LN gamma=1/beta=0,
    fc_out.weight * 0.1, fc_out.bias = 0 (matches the module's custom init)."""
    H = hidden_dim
    ff = 4 * H

    def lin(k, fan_in, fan_out):
        kw, kb = jax.random.split(k)
        bound = 1.0 / jnp.sqrt(float(fan_in))
        w = jax.random.uniform(kw, (fan_in, fan_out), jnp.float32, -bound, bound)
        b = jax.random.uniform(kb, (1, fan_out), jnp.float32, -bound, bound)
        return w, b

    k_emb, k_pe, k_fc, k_layers = jax.random.split(key, 4)
    emb_w, emb_b = lin(k_emb, num_inputs, H)
    # nn.Parameter(torch.zeros(...)) in the module; small random values so the
    # positional-add path is actually exercised by the numeric check.
    pos_enc = 0.02 * jax.random.normal(k_pe, (1, num_inputs, H), jnp.float32)
    fc_w, fc_b = lin(k_fc, H, output_dim)
    fc_w = fc_w * 0.1
    fc_b = fc_b * 0.0

    w_in, b_in, w_out, b_out = [], [], [], []
    w1, b1, w2, b2 = [], [], [], []
    g1, be1, g2, be2 = [], [], [], []
    for lk in jax.random.split(k_layers, num_layers):
        k1, k2, k3, k4 = jax.random.split(lk, 4)
        wi, bi = lin(k1, H, 3 * H)
        wo, bo = lin(k2, H, H)
        wa, ba = lin(k3, H, ff)
        wb, bb = lin(k4, ff, H)
        w_in.append(wi); b_in.append(bi); w_out.append(wo); b_out.append(bo)
        w1.append(wa); b1.append(ba); w2.append(wb); b2.append(bb)
        g1.append(jnp.ones((1, H), jnp.float32)); be1.append(jnp.zeros((1, H), jnp.float32))
        g2.append(jnp.ones((1, H), jnp.float32)); be2.append(jnp.zeros((1, H), jnp.float32))

    st = lambda xs: jnp.stack(xs, axis=0)
    return {
        "emb_w": emb_w, "emb_b": emb_b, "pos_enc": pos_enc,
        "w_in": st(w_in), "b_in": st(b_in), "w_out": st(w_out), "b_out": st(b_out),
        "w_ff1": st(w1), "b_ff1": st(b1), "w_ff2": st(w2), "b_ff2": st(b2),
        "ln1_g": st(g1), "ln1_b": st(be1), "ln2_g": st(g2), "ln2_b": st(be2),
        "fc_w": fc_w, "fc_b": fc_b,
    }


def transformer_classifier_ref(x, p, *, num_heads, num_layers,
                               matmul_dtype=jnp.float32):
    """Pure-JAX reference mirroring the kernel's precision policy (MXU operands in
    `matmul_dtype`, f32 accumulation / elementwise). With matmul_dtype=float32 this
    is a faithful eval-mode reproduction of the PyTorch forward."""
    dt = matmul_dtype
    H = p["emb_w"].shape[1]
    hd = H // num_heads
    scale = 1.0 / float(hd) ** 0.5

    def mmul(a, w):
        return jnp.dot(a.astype(dt), w.astype(dt), preferred_element_type=jnp.float32)

    def layer_norm(z, g, b):
        mu = jnp.mean(z, axis=-1, keepdims=True)
        var = jnp.mean(jnp.square(z - mu), axis=-1, keepdims=True)
        return (z - mu) * jax.lax.rsqrt(var + 1e-5) * g + b

    h = mmul(x, p["emb_w"]) + p["emb_b"] + p["pos_enc"]
    for li in range(num_layers):
        qkv = mmul(h, p["w_in"][li]) + p["b_in"][li]
        q = qkv[..., 0 * H:1 * H] * scale
        k = qkv[..., 1 * H:2 * H]
        v = qkv[..., 2 * H:3 * H]
        heads = []
        for hh in range(num_heads):
            sl = slice(hh * hd, (hh + 1) * hd)
            s = jnp.einsum('bqd,bkd->bqk', q[..., sl].astype(dt), k[..., sl].astype(dt),
                           preferred_element_type=jnp.float32)
            s = s - jnp.max(s, axis=-1, keepdims=True)
            pw = jnp.exp(s)
            l = jnp.sum(pw, axis=-1, keepdims=True)
            o = jnp.einsum('bqk,bkd->bqd', pw.astype(dt), v[..., sl].astype(dt),
                           preferred_element_type=jnp.float32)
            heads.append(o * (1.0 / l))
        attn = mmul(jnp.concatenate(heads, axis=-1), p["w_out"][li]) + p["b_out"][li]
        h = layer_norm(h + attn, p["ln1_g"][li], p["ln1_b"][li])
        ffo = jnp.maximum(mmul(h, p["w_ff1"][li]) + p["b_ff1"][li], 0.0)
        ffo = mmul(ffo, p["w_ff2"][li]) + p["b_ff2"][li]
        h = layer_norm(h + ffo, p["ln2_g"][li], p["ln2_b"][li])
    pooled = jnp.mean(h, axis=1)
    return pooled @ p["fc_w"] + p["fc_b"]


if __name__ == "__main__":
    import numpy as np

    B = 2
    num_inputs = 16      # sequence length == feature dim (per module's positional encoding)
    hidden_dim = 32
    num_heads = 2
    num_layers = 2
    output_dim = 1

    key = jax.random.PRNGKey(0)
    kp, kx = jax.random.split(key)
    params = init_params(kp, num_inputs, hidden_dim, num_heads, num_layers, output_dim)
    x = jax.random.normal(kx, (B, num_inputs, num_inputs), jnp.float32)

    # Performance configuration: bf16 MXU operands, f32 accumulation.
    out_bf16 = transformer_classifier_forward(
        x, params, num_heads=num_heads, num_layers=num_layers,
        matmul_dtype=jnp.bfloat16)
    jax.block_until_ready(out_bf16)
    ref_bf16 = transformer_classifier_ref(
        x, params, num_heads=num_heads, num_layers=num_layers,
        matmul_dtype=jnp.bfloat16)
    np.testing.assert_allclose(np.asarray(out_bf16), np.asarray(ref_bf16),
                               rtol=5e-3, atol=5e-4)

    # Full-f32 configuration: faithful to the PyTorch eval-mode forward.
    out_f32 = transformer_classifier_forward(
        x, params, num_heads=num_heads, num_layers=num_layers,
        matmul_dtype=jnp.float32)
    jax.block_until_ready(out_f32)
    ref_f32 = transformer_classifier_ref(
        x, params, num_heads=num_heads, num_layers=num_layers,
        matmul_dtype=jnp.float32)
    np.testing.assert_allclose(np.asarray(out_f32), np.asarray(ref_f32),
                               rtol=1e-4, atol=1e-5)

    print("KERNEL_OK")
</pallas_src>

<mosaic_0001>
module attributes {stable_mosaic.version = 11 : i64} {
  func.func @transformer_kernel(%arg0: i32, %arg1: memref<1x16x16xbf16, #tpu.memory_space<vmem>>, %arg2: memref<16x32xf32, #tpu.memory_space<vmem>>, %arg3: memref<16x32xbf16, #tpu.memory_space<vmem>>, %arg4: memref<1x32xf32, #tpu.memory_space<vmem>>, %arg5: memref<2x32x96xbf16, #tpu.memory_space<vmem>>, %arg6: memref<2x1x96xf32, #tpu.memory_space<vmem>>, %arg7: memref<2x32x32xbf16, #tpu.memory_space<vmem>>, %arg8: memref<2x1x32xf32, #tpu.memory_space<vmem>>, %arg9: memref<2x32x128xbf16, #tpu.memory_space<vmem>>, %arg10: memref<2x1x128xf32, #tpu.memory_space<vmem>>, %arg11: memref<2x128x32xbf16, #tpu.memory_space<vmem>>, %arg12: memref<2x1x32xf32, #tpu.memory_space<vmem>>, %arg13: memref<2x1x32xf32, #tpu.memory_space<vmem>>, %arg14: memref<2x1x32xf32, #tpu.memory_space<vmem>>, %arg15: memref<2x1x32xf32, #tpu.memory_space<vmem>>, %arg16: memref<2x1x32xf32, #tpu.memory_space<vmem>>, %arg17: memref<1x1x32xf32, #tpu.memory_space<vmem>>) attributes {dimension_semantics = [#tpu.dimension_semantics<parallel>], iteration_bounds = array<i64: 2>, scalar_prefetch = 0 : i64, scratch_operands = 0 : i64, tpu.core_type = #tpu.core_type<tc>, window_params = [{transform_indices = @transform_0, window_bounds = array<i64: 1, 16, 16>}, {pipeline_mode = #tpu.pipeline_mode<synchronous>, transform_indices = @transform_1, window_bounds = array<i64: 16, 32>}, {pipeline_mode = #tpu.pipeline_mode<synchronous>, transform_indices = @transform_2, window_bounds = array<i64: 16, 32>}, {pipeline_mode = #tpu.pipeline_mode<synchronous>, transform_indices = @transform_3, window_bounds = array<i64: 1, 32>}, {pipeline_mode = #tpu.pipeline_mode<synchronous>, transform_indices = @transform_4, window_bounds = array<i64: 2, 32, 96>}, {pipeline_mode = #tpu.pipeline_mode<synchronous>, transform_indices = @transform_5, window_bounds = array<i64: 2, 1, 96>}, {pipeline_mode = #tpu.pipeline_mode<synchronous>, transform_indices = @transform_6, window_bounds = array<i64: 2, 32, 32>}, {pipeline_mode = #tpu.pipeline_mode<synchronous>, transform_indices = @transform_7, window_bounds = array<i64: 2, 1, 32>}, {pipeline_mode = #tpu.pipeline_mode<synchronous>, transform_indices = @transform_8, window_bounds = array<i64: 2, 32, 128>}, {pipeline_mode = #tpu.pipeline_mode<synchronous>, transform_indices = @transform_9, window_bounds = array<i64: 2, 1, 128>}, {pipeline_mode = #tpu.pipeline_mode<synchronous>, transform_indices = @transform_10, window_bounds = array<i64: 2, 128, 32>}, {pipeline_mode = #tpu.pipeline_mode<synchronous>, transform_indices = @transform_11, window_bounds = array<i64: 2, 1, 32>}, {pipeline_mode = #tpu.pipeline_mode<synchronous>, transform_indices = @transform_12, window_bounds = array<i64: 2, 1, 32>}, {pipeline_mode = #tpu.pipeline_mode<synchronous>, transform_indices = @transform_13, window_bounds = array<i64: 2, 1, 32>}, {pipeline_mode = #tpu.pipeline_mode<synchronous>, transform_indices = @transform_14, window_bounds = array<i64: 2, 1, 32>}, {pipeline_mode = #tpu.pipeline_mode<synchronous>, transform_indices = @transform_15, window_bounds = array<i64: 2, 1, 32>}, {transform_indices = @transform_16, window_bounds = array<i64: 1, 1, 32>}]} {
    %c0 = arith.constant 0 : index
    %c0_0 = arith.constant 0 : index
    %c0_1 = arith.constant 0 : index
    %0 = vector.load %arg1[%c0, %c0_0, %c0_1] : memref<1x16x16xbf16, #tpu.memory_space<vmem>>, vector<1x16x16xbf16>
    %1 = vector.shape_cast %0 : vector<1x16x16xbf16> to vector<16x16xbf16>
    %c0_2 = arith.constant 0 : index
    %c0_3 = arith.constant 0 : index
    %2 = vector.load %arg3[%c0_2, %c0_3] : memref<16x32xbf16, #tpu.memory_space<vmem>>, vector<16x32xbf16>
    %cst = arith.constant dense<0.000000e+00> : vector<16x32xf32>
    %3 = tpu.matmul %1, %2, %cst {dimension_numbers = #tpu.dot_dimension_numbers<[1], [0], [0], [1], [0, 0, 1, 1], [], []>} : vector<16x16xbf16>, vector<16x32xbf16>, vector<16x32xf32> -> vector<16x32xf32>
    %c0_4 = arith.constant 0 : index
    %c0_5 = arith.constant 0 : index
    %4 = vector.load %arg4[%c0_4, %c0_5] : memref<1x32xf32, #tpu.memory_space<vmem>>, vector<1x32xf32>
    %5 = vector.broadcast %4 : vector<1x32xf32> to vector<16x32xf32>
    %6 = arith.addf %3, %5 : vector<16x32xf32>
    %c0_6 = arith.constant 0 : index
    %c0_7 = arith.constant 0 : index
    %7 = vector.load %arg2[%c0_6, %c0_7] : memref<16x32xf32, #tpu.memory_space<vmem>>, vector<16x32xf32>
    %8 = arith.addf %6, %7 : vector<16x32xf32>
    %9 = arith.truncf %8 : vector<16x32xf32> to vector<16x32xbf16>
    %c0_8 = arith.constant 0 : index
    %c0_9 = arith.constant 0 : index
    %c0_10 = arith.constant 0 : index
    %10 = vector.load %arg5[%c0_8, %c0_9, %c0_10] : memref<2x32x96xbf16, #tpu.memory_space<vmem>>, vector<1x32x96xbf16>
    %11 = vector.shape_cast %10 : vector<1x32x96xbf16> to vector<32x96xbf16>
    %cst_11 = arith.constant dense<0.000000e+00> : vector<16x96xf32>
    %12 = tpu.matmul %9, %11, %cst_11 {dimension_numbers = #tpu.dot_dimension_numbers<[1], [0], [0], [1], [0, 0, 1, 1], [], []>} : vector<16x32xbf16>, vector<32x96xbf16>, vector<16x96xf32> -> vector<16x96xf32>
    %c0_12 = arith.constant 0 : index
    %c0_13 = arith.constant 0 : index
    %c0_14 = arith.constant 0 : index
    %13 = vector.load %arg6[%c0_12, %c0_13, %c0_14] : memref<2x1x96xf32, #tpu.memory_space<vmem>>, vector<1x1x96xf32>
    %14 = vector.shape_cast %13 : vector<1x1x96xf32> to vector<1x96xf32>
    %15 = vector.broadcast %14 : vector<1x96xf32> to vector<16x96xf32>
    %16 = arith.addf %12, %15 : vector<16x96xf32>
    %17 = vector.extract_strided_slice %16 {offsets = [0, 0], sizes = [16, 16], strides = [1, 1]} : vector<16x96xf32> to vector<16x16xf32>
    %cst_15 = arith.constant 2.500000e-01 : f32
    %18 = vector.broadcast %cst_15 : f32 to vector<16x16xf32>
    %19 = arith.mulf %17, %18 : vector<16x16xf32>
    %20 = vector.shape_cast %19 : vector<16x16xf32> to vector<1x16x16xf32>
    %21 = vector.extract_strided_slice %16 {offsets = [0, 16], sizes = [16, 16], strides = [1, 1]} : vector<16x96xf32> to vector<16x16xf32>
    %cst_16 = arith.constant 2.500000e-01 : f32
    %22 = vector.broadcast %cst_16 : f32 to vector<16x16xf32>
    %23 = arith.mulf %21, %22 : vector<16x16xf32>
    %24 = vector.shape_cast %23 : vector<16x16xf32> to vector<1x16x16xf32>
    %25 = tpu.concatenate %20, %24 in 0 : vector<1x16x16xf32>, vector<1x16x16xf32> -> vector<2x16x16xf32>
    %26 = arith.truncf %25 : vector<2x16x16xf32> to vector<2x16x16xbf16>
    %27 = vector.extract_strided_slice %16 {offsets = [0, 32], sizes = [16, 16], strides = [1, 1]} : vector<16x96xf32> to vector<16x16xf32>
    %28 = vector.shape_cast %27 : vector<16x16xf32> to vector<1x16x16xf32>
    %29 = vector.extract_strided_slice %16 {offsets = [0, 48], sizes = [16, 16], strides = [1, 1]} : vector<16x96xf32> to vector<16x16xf32>
    %30 = vector.shape_cast %29 : vector<16x16xf32> to vector<1x16x16xf32>
    %31 = tpu.concatenate %28, %30 in 0 : vector<1x16x16xf32>, vector<1x16x16xf32> -> vector<2x16x16xf32>
    %32 = arith.truncf %31 : vector<2x16x16xf32> to vector<2x16x16xbf16>
    %33 = vector.extract_strided_slice %16 {offsets = [0, 64], sizes = [16, 16], strides = [1, 1]} : vector<16x96xf32> to vector<16x16xf32>
    %34 = vector.shape_cast %33 : vector<16x16xf32> to vector<1x16x16xf32>
    %35 = vector.extract_strided_slice %16 {offsets = [0, 80], sizes = [16, 16], strides = [1, 1]} : vector<16x96xf32> to vector<16x16xf32>
    %36 = vector.shape_cast %35 : vector<16x16xf32> to vector<1x16x16xf32>
    %37 = tpu.concatenate %34, %36 in 0 : vector<1x16x16xf32>, vector<1x16x16xf32> -> vector<2x16x16xf32>
    %38 = arith.truncf %37 : vector<2x16x16xf32> to vector<2x16x16xbf16>
    "tpu.trace_start"() <{level = 10 : i32, message = "bqd,bkd->bqk"}> : () -> ()
    %cst_17 = arith.constant dense<0.000000e+00> : vector<2x16x16xf32>
    %39 = tpu.matmul %26, %32, %cst_17 {dimension_numbers = #tpu.dot_dimension_numbers<[2], [2], [1], [1], [0, 0, 0, 1, 1, 1], [0], [0]>} : vector<2x16x16xbf16>, vector<2x16x16xbf16>, vector<2x16x16xf32> -> vector<2x16x16xf32>
    "tpu.trace_stop"() : () -> ()
    %cst_18 = arith.constant dense<0xFF800000> : vector<2x16xf32>
    %40 = vector.multi_reduction <maximumf>, %39, %cst_18 [2] : vector<2x16x16xf32> to vector<2x16xf32>
    %41 = vector.shape_cast %40 : vector<2x16xf32> to vector<2x16x1xf32>
    %42 = vector.broadcast %41 : vector<2x16x1xf32> to vector<2x16x16xf32>
    %43 = arith.subf %39, %42 : vector<2x16x16xf32>
    %44 = math.exp %43 : vector<2x16x16xf32>
    %cst_19 = arith.constant dense<0.000000e+00> : vector<2x16xf32>
    %45 = vector.multi_reduction <add>, %44, %cst_19 [2] : vector<2x16x16xf32> to vector<2x16xf32>
    %46 = vector.shape_cast %45 : vector<2x16xf32> to vector<2x16x1xf32>
    %47 = arith.truncf %44 : vector<2x16x16xf32> to vector<2x16x16xbf16>
    "tpu.trace_start"() <{level = 10 : i32, message = "bqk,bkd->bqd"}> : () -> ()
    %cst_20 = arith.constant dense<0.000000e+00> : vector<2x16x16xf32>
    %48 = tpu.matmul %47, %38, %cst_20 {dimension_numbers = #tpu.dot_dimension_numbers<[2], [1], [1], [2], [0, 0, 0, 1, 1, 2], [0], [0]>} : vector<2x16x16xbf16>, vector<2x16x16xbf16>, vector<2x16x16xf32> -> vector<2x16x16xf32>
    "tpu.trace_stop"() : () -> ()
    %49 = tpu.reciprocal %46 : vector<2x16x1xf32> -> vector<2x16x1xf32>
    %50 = vector.broadcast %49 : vector<2x16x1xf32> to vector<2x16x16xf32>
    %51 = arith.mulf %48, %50 : vector<2x16x16xf32>
    %52 = vector.extract_strided_slice %51 {offsets = [0, 0, 0], sizes = [1, 16, 16], strides = [1, 1, 1]} : vector<2x16x16xf32> to vector<1x16x16xf32>
    %53 = vector.extract_strided_slice %51 {offsets = [1, 0, 0], sizes = [1, 16, 16], strides = [1, 1, 1]} : vector<2x16x16xf32> to vector<1x16x16xf32>
    %54 = tpu.concatenate %52, %53 in 2 : vector<1x16x16xf32>, vector<1x16x16xf32> -> vector<1x16x32xf32>
    %55 = vector.shape_cast %54 : vector<1x16x32xf32> to vector<16x32xf32>
    %56 = arith.truncf %55 : vector<16x32xf32> to vector<16x32xbf16>
    %c0_21 = arith.constant 0 : index
    %c0_22 = arith.constant 0 : index
    %c0_23 = arith.constant 0 : index
    %57 = vector.load %arg7[%c0_21, %c0_22, %c0_23] : memref<2x32x32xbf16, #tpu.memory_space<vmem>>, vector<1x32x32xbf16>
    %58 = vector.shape_cast %57 : vector<1x32x32xbf16> to vector<32x32xbf16>
    %cst_24 = arith.constant dense<0.000000e+00> : vector<16x32xf32>
    %59 = tpu.matmul %56, %58, %cst_24 {dimension_numbers = #tpu.dot_dimension_numbers<[1], [0], [0], [1], [0, 0, 1, 1], [], []>} : vector<16x32xbf16>, vector<32x32xbf16>, vector<16x32xf32> -> vector<16x32xf32>
    %c0_25 = arith.constant 0 : index
    %c0_26 = arith.constant 0 : index
    %c0_27 = arith.constant 0 : index
    %60 = vector.load %arg8[%c0_25, %c0_26, %c0_27] : memref<2x1x32xf32, #tpu.memory_space<vmem>>, vector<1x1x32xf32>
    %61 = vector.shape_cast %60 : vector<1x1x32xf32> to vector<1x32xf32>
    %62 = vector.broadcast %61 : vector<1x32xf32> to vector<16x32xf32>
    %63 = arith.addf %59, %62 : vector<16x32xf32>
    %64 = arith.addf %8, %63 : vector<16x32xf32>
    %c0_28 = arith.constant 0 : index
    %c0_29 = arith.constant 0 : index
    %c0_30 = arith.constant 0 : index
    %65 = vector.load %arg13[%c0_28, %c0_29, %c0_30] : memref<2x1x32xf32, #tpu.memory_space<vmem>>, vector<1x1x32xf32>
    %66 = vector.shape_cast %65 : vector<1x1x32xf32> to vector<1x32xf32>
    %c0_31 = arith.constant 0 : index
    %c0_32 = arith.constant 0 : index
    %c0_33 = arith.constant 0 : index
    %67 = vector.load %arg14[%c0_31, %c0_32, %c0_33] : memref<2x1x32xf32, #tpu.memory_space<vmem>>, vector<1x1x32xf32>
    %68 = vector.shape_cast %67 : vector<1x1x32xf32> to vector<1x32xf32>
    %cst_34 = arith.constant dense<0.000000e+00> : vector<16xf32>
    %69 = vector.multi_reduction <add>, %64, %cst_34 [1] : vector<16x32xf32> to vector<16xf32>
    %70 = vector.shape_cast %69 : vector<16xf32> to vector<16x1xf32>
    %cst_35 = arith.constant 3.200000e+01 : f32
    %71 = vector.broadcast %cst_35 : f32 to vector<16x1xf32>
    %72 = arith.divf %70, %71 : vector<16x1xf32>
    %73 = vector.broadcast %72 : vector<16x1xf32> to vector<16x32xf32>
    %74 = arith.subf %64, %73 : vector<16x32xf32>
    %75 = arith.mulf %74, %74 : vector<16x32xf32>
    %cst_36 = arith.constant dense<0.000000e+00> : vector<16xf32>
    %76 = vector.multi_reduction <add>, %75, %cst_36 [1] : vector<16x32xf32> to vector<16xf32>
    %77 = vector.shape_cast %76 : vector<16xf32> to vector<16x1xf32>
    %cst_37 = arith.constant 3.200000e+01 : f32
    %78 = vector.broadcast %cst_37 : f32 to vector<16x1xf32>
    %79 = arith.divf %77, %78 : vector<16x1xf32>
    %80 = vector.broadcast %72 : vector<16x1xf32> to vector<16x32xf32>
    %81 = arith.subf %64, %80 : vector<16x32xf32>
    %cst_38 = arith.constant 9.99999974E-6 : f32
    %82 = vector.broadcast %cst_38 : f32 to vector<16x1xf32>
    %83 = arith.addf %79, %82 : vector<16x1xf32>
    %84 = math.rsqrt %83 : vector<16x1xf32>
    %85 = vector.broadcast %84 : vector<16x1xf32> to vector<16x32xf32>
    %86 = arith.mulf %81, %85 : vector<16x32xf32>
    %87 = vector.broadcast %66 : vector<1x32xf32> to vector<16x32xf32>
    %88 = arith.mulf %86, %87 : vector<16x32xf32>
    %89 = vector.broadcast %68 : vector<1x32xf32> to vector<16x32xf32>
    %90 = arith.addf %88, %89 : vector<16x32xf32>
    %91 = arith.truncf %90 : vector<16x32xf32> to vector<16x32xbf16>
    %c0_39 = arith.constant 0 : index
    %c0_40 = arith.constant 0 : index
    %c0_41 = arith.constant 0 : index
    %92 = vector.load %arg9[%c0_39, %c0_40, %c0_41] : memref<2x32x128xbf16, #tpu.memory_space<vmem>>, vector<1x32x128xbf16>
    %93 = vector.shape_cast %92 : vector<1x32x128xbf16> to vector<32x128xbf16>
    %cst_42 = arith.constant dense<0.000000e+00> : vector<16x128xf32>
    %94 = tpu.matmul %91, %93, %cst_42 {dimension_numbers = #tpu.dot_dimension_numbers<[1], [0], [0], [1], [0, 0, 1, 1], [], []>} : vector<16x32xbf16>, vector<32x128xbf16>, vector<16x128xf32> -> vector<16x128xf32>
    %c0_43 = arith.constant 0 : index
    %c0_44 = arith.constant 0 : index
    %c0_45 = arith.constant 0 : index
    %95 = vector.load %arg10[%c0_43, %c0_44, %c0_45] : memref<2x1x128xf32, #tpu.memory_space<vmem>>, vector<1x1x128xf32>
    %96 = vector.shape_cast %95 : vector<1x1x128xf32> to vector<1x128xf32>
    %97 = vector.broadcast %96 : vector<1x128xf32> to vector<16x128xf32>
    %98 = arith.addf %94, %97 : vector<16x128xf32>
    %cst_46 = arith.constant 0.000000e+00 : f32
    %99 = vector.broadcast %cst_46 : f32 to vector<16x128xf32>
    %100 = arith.maximumf %98, %99 : vector<16x128xf32>
    %101 = arith.truncf %100 : vector<16x128xf32> to vector<16x128xbf16>
    %c0_47 = arith.constant 0 : index
    %c0_48 = arith.constant 0 : index
    %c0_49 = arith.constant 0 : index
    %102 = vector.load %arg11[%c0_47, %c0_48, %c0_49] : memref<2x128x32xbf16, #tpu.memory_space<vmem>>, vector<1x128x32xbf16>
    %103 = vector.shape_cast %102 : vector<1x128x32xbf16> to vector<128x32xbf16>
    %cst_50 = arith.constant dense<0.000000e+00> : vector<16x32xf32>
    %104 = tpu.matmul %101, %103, %cst_50 {dimension_numbers = #tpu.dot_dimension_numbers<[1], [0], [0], [1], [0, 0, 1, 1], [], []>} : vector<16x128xbf16>, vector<128x32xbf16>, vector<16x32xf32> -> vector<16x32xf32>
    %c0_51 = arith.constant 0 : index
    %c0_52 = arith.constant 0 : index
    %c0_53 = arith.constant 0 : index
    %105 = vector.load %arg12[%c0_51, %c0_52, %c0_53] : memref<2x1x32xf32, #tpu.memory_space<vmem>>, vector<1x1x32xf32>
    %106 = vector.shape_cast %105 : vector<1x1x32xf32> to vector<1x32xf32>
    %107 = vector.broadcast %106 : vector<1x32xf32> to vector<16x32xf32>
    %108 = arith.addf %104, %107 : vector<16x32xf32>
    %109 = arith.addf %90, %108 : vector<16x32xf32>
    %c0_54 = arith.constant 0 : index
    %c0_55 = arith.constant 0 : index
    %c0_56 = arith.constant 0 : index
    %110 = vector.load %arg15[%c0_54, %c0_55, %c0_56] : memref<2x1x32xf32, #tpu.memory_space<vmem>>, vector<1x1x32xf32>
    %111 = vector.shape_cast %110 : vector<1x1x32xf32> to vector<1x32xf32>
    %c0_57 = arith.constant 0 : index
    %c0_58 = arith.constant 0 : index
    %c0_59 = arith.constant 0 : index
    %112 = vector.load %arg16[%c0_57, %c0_58, %c0_59] : memref<2x1x32xf32, #tpu.memory_space<vmem>>, vector<1x1x32xf32>
    %113 = vector.shape_cast %112 : vector<1x1x32xf32> to vector<1x32xf32>
    %cst_60 = arith.constant dense<0.000000e+00> : vector<16xf32>
    %114 = vector.multi_reduction <add>, %109, %cst_60 [1] : vector<16x32xf32> to vector<16xf32>
    %115 = vector.shape_cast %114 : vector<16xf32> to vector<16x1xf32>
    %cst_61 = arith.constant 3.200000e+01 : f32
    %116 = vector.broadcast %cst_61 : f32 to vector<16x1xf32>
    %117 = arith.divf %115, %116 : vector<16x1xf32>
    %118 = vector.broadcast %117 : vector<16x1xf32> to vector<16x32xf32>
    %119 = arith.subf %109, %118 : vector<16x32xf32>
    %120 = arith.mulf %119, %119 : vector<16x32xf32>
    %cst_62 = arith.constant dense<0.000000e+00> : vector<16xf32>
    %121 = vector.multi_reduction <add>, %120, %cst_62 [1] : vector<16x32xf32> to vector<16xf32>
    %122 = vector.shape_cast %121 : vector<16xf32> to vector<16x1xf32>
    %cst_63 = arith.constant 3.200000e+01 : f32
    %123 = vector.broadcast %cst_63 : f32 to vector<16x1xf32>
    %124 = arith.divf %122, %123 : vector<16x1xf32>
    %125 = vector.broadcast %117 : vector<16x1xf32> to vector<16x32xf32>
    %126 = arith.subf %109, %125 : vector<16x32xf32>
    %cst_64 = arith.constant 9.99999974E-6 : f32
    %127 = vector.broadcast %cst_64 : f32 to vector<16x1xf32>
    %128 = arith.addf %124, %127 : vector<16x1xf32>
    %129 = math.rsqrt %128 : vector<16x1xf32>
    %130 = vector.broadcast %129 : vector<16x1xf32> to vector<16x32xf32>
    %131 = arith.mulf %126, %130 : vector<16x32xf32>
    %132 = vector.broadcast %111 : vector<1x32xf32> to vector<16x32xf32>
    %133 = arith.mulf %131, %132 : vector<16x32xf32>
    %134 = vector.broadcast %113 : vector<1x32xf32> to vector<16x32xf32>
    %135 = arith.addf %133, %134 : vector<16x32xf32>
    %136 = arith.truncf %135 : vector<16x32xf32> to vector<16x32xbf16>
    %c1 = arith.constant 1 : index
    %c0_65 = arith.constant 0 : index
    %c0_66 = arith.constant 0 : index
    %137 = vector.load %arg5[%c1, %c0_65, %c0_66] : memref<2x32x96xbf16, #tpu.memory_space<vmem>>, vector<1x32x96xbf16>
    %138 = vector.shape_cast %137 : vector<1x32x96xbf16> to vector<32x96xbf16>
    %cst_67 = arith.constant dense<0.000000e+00> : vector<16x96xf32>
    %139 = tpu.matmul %136, %138, %cst_67 {dimension_numbers = #tpu.dot_dimension_numbers<[1], [0], [0], [1], [0, 0, 1, 1], [], []>} : vector<16x32xbf16>, vector<32x96xbf16>, vector<16x96xf32> -> vector<16x96xf32>
    %c1_68 = arith.constant 1 : index
    %c0_69 = arith.constant 0 : index
    %c0_70 = arith.constant 0 : index
    %140 = vector.load %arg6[%c1_68, %c0_69, %c0_70] : memref<2x1x96xf32, #tpu.memory_space<vmem>>, vector<1x1x96xf32>
    %141 = vector.shape_cast %140 : vector<1x1x96xf32> to vector<1x96xf32>
    %142 = vector.broadcast %141 : vector<1x96xf32> to vector<16x96xf32>
    %143 = arith.addf %139, %142 : vector<16x96xf32>
    %144 = vector.extract_strided_slice %143 {offsets = [0, 0], sizes = [16, 16], strides = [1, 1]} : vector<16x96xf32> to vector<16x16xf32>
    %cst_71 = arith.constant 2.500000e-01 : f32
    %145 = vector.broadcast %cst_71 : f32 to vector<16x16xf32>
    %146 = arith.mulf %144, %145 : vector<16x16xf32>
    %147 = vector.shape_cast %146 : vector<16x16xf32> to vector<1x16x16xf32>
    %148 = vector.extract_strided_slice %143 {offsets = [0, 16], sizes = [16, 16], strides = [1, 1]} : vector<16x96xf32> to vector<16x16xf32>
    %cst_72 = arith.constant 2.500000e-01 : f32
    %149 = vector.broadcast %cst_72 : f32 to vector<16x16xf32>
    %150 = arith.mulf %148, %149 : vector<16x16xf32>
    %151 = vector.shape_cast %150 : vector<16x16xf32> to vector<1x16x16xf32>
    %152 = tpu.concatenate %147, %151 in 0 : vector<1x16x16xf32>, vector<1x16x16xf32> -> vector<2x16x16xf32>
    %153 = arith.truncf %152 : vector<2x16x16xf32> to vector<2x16x16xbf16>
    %154 = vector.extract_strided_slice %143 {offsets = [0, 32], sizes = [16, 16], strides = [1, 1]} : vector<16x96xf32> to vector<16x16xf32>
    %155 = vector.shape_cast %154 : vector<16x16xf32> to vector<1x16x16xf32>
    %156 = vector.extract_strided_slice %143 {offsets = [0, 48], sizes = [16, 16], strides = [1, 1]} : vector<16x96xf32> to vector<16x16xf32>
    %157 = vector.shape_cast %156 : vector<16x16xf32> to vector<1x16x16xf32>
    %158 = tpu.concatenate %155, %157 in 0 : vector<1x16x16xf32>, vector<1x16x16xf32> -> vector<2x16x16xf32>
    %159 = arith.truncf %158 : vector<2x16x16xf32> to vector<2x16x16xbf16>
    %160 = vector.extract_strided_slice %143 {offsets = [0, 64], sizes = [16, 16], strides = [1, 1]} : vector<16x96xf32> to vector<16x16xf32>
    %161 = vector.shape_cast %160 : vector<16x16xf32> to vector<1x16x16xf32>
    %162 = vector.extract_strided_slice %143 {offsets = [0, 80], sizes = [16, 16], strides = [1, 1]} : vector<16x96xf32> to vector<16x16xf32>
    %163 = vector.shape_cast %162 : vector<16x16xf32> to vector<1x16x16xf32>
    %164 = tpu.concatenate %161, %163 in 0 : vector<1x16x16xf32>, vector<1x16x16xf32> -> vector<2x16x16xf32>
    %165 = arith.truncf %164 : vector<2x16x16xf32> to vector<2x16x16xbf16>
    "tpu.trace_start"() <{level = 10 : i32, message = "bqd,bkd->bqk"}> : () -> ()
    %cst_73 = arith.constant dense<0.000000e+00> : vector<2x16x16xf32>
    %166 = tpu.matmul %153, %159, %cst_73 {dimension_numbers = #tpu.dot_dimension_numbers<[2], [2], [1], [1], [0, 0, 0, 1, 1, 1], [0], [0]>} : vector<2x16x16xbf16>, vector<2x16x16xbf16>, vector<2x16x16xf32> -> vector<2x16x16xf32>
    "tpu.trace_stop"() : () -> ()
    %cst_74 = arith.constant dense<0xFF800000> : vector<2x16xf32>
    %167 = vector.multi_reduction <maximumf>, %166, %cst_74 [2] : vector<2x16x16xf32> to vector<2x16xf32>
    %168 = vector.shape_cast %167 : vector<2x16xf32> to vector<2x16x1xf32>
    %169 = vector.broadcast %168 : vector<2x16x1xf32> to vector<2x16x16xf32>
    %170 = arith.subf %166, %169 : vector<2x16x16xf32>
    %171 = math.exp %170 : vector<2x16x16xf32>
    %cst_75 = arith.constant dense<0.000000e+00> : vector<2x16xf32>
    %172 = vector.multi_reduction <add>, %171, %cst_75 [2] : vector<2x16x16xf32> to vector<2x16xf32>
    %173 = vector.shape_cast %172 : vector<2x16xf32> to vector<2x16x1xf32>
    %174 = arith.truncf %171 : vector<2x16x16xf32> to vector<2x16x16xbf16>
    "tpu.trace_start"() <{level = 10 : i32, message = "bqk,bkd->bqd"}> : () -> ()
    %cst_76 = arith.constant dense<0.000000e+00> : vector<2x16x16xf32>
    %175 = tpu.matmul %174, %165, %cst_76 {dimension_numbers = #tpu.dot_dimension_numbers<[2], [1], [1], [2], [0, 0, 0, 1, 1, 2], [0], [0]>} : vector<2x16x16xbf16>, vector<2x16x16xbf16>, vector<2x16x16xf32> -> vector<2x16x16xf32>
    "tpu.trace_stop"() : () -> ()
    %176 = tpu.reciprocal %173 : vector<2x16x1xf32> -> vector<2x16x1xf32>
    %177 = vector.broadcast %176 : vector<2x16x1xf32> to vector<2x16x16xf32>
    %178 = arith.mulf %175, %177 : vector<2x16x16xf32>
    %179 = vector.extract_strided_slice %178 {offsets = [0, 0, 0], sizes = [1, 16, 16], strides = [1, 1, 1]} : vector<2x16x16xf32> to vector<1x16x16xf32>
    %180 = vector.extract_strided_slice %178 {offsets = [1, 0, 0], sizes = [1, 16, 16], strides = [1, 1, 1]} : vector<2x16x16xf32> to vector<1x16x16xf32>
    %181 = tpu.concatenate %179, %180 in 2 : vector<1x16x16xf32>, vector<1x16x16xf32> -> vector<1x16x32xf32>
    %182 = vector.shape_cast %181 : vector<1x16x32xf32> to vector<16x32xf32>
    %183 = arith.truncf %182 : vector<16x32xf32> to vector<16x32xbf16>
    %c1_77 = arith.constant 1 : index
    %c0_78 = arith.constant 0 : index
    %c0_79 = arith.constant 0 : index
    %184 = vector.load %arg7[%c1_77, %c0_78, %c0_79] : memref<2x32x32xbf16, #tpu.memory_space<vmem>>, vector<1x32x32xbf16>
    %185 = vector.shape_cast %184 : vector<1x32x32xbf16> to vector<32x32xbf16>
    %cst_80 = arith.constant dense<0.000000e+00> : vector<16x32xf32>
    %186 = tpu.matmul %183, %185, %cst_80 {dimension_numbers = #tpu.dot_dimension_numbers<[1], [0], [0], [1], [0, 0, 1, 1], [], []>} : vector<16x32xbf16>, vector<32x32xbf16>, vector<16x32xf32> -> vector<16x32xf32>
    %c1_81 = arith.constant 1 : index
    %c0_82 = arith.constant 0 : index
    %c0_83 = arith.constant 0 : index
    %187 = vector.load %arg8[%c1_81, %c0_82, %c0_83] : memref<2x1x32xf32, #tpu.memory_space<vmem>>, vector<1x1x32xf32>
    %188 = vector.shape_cast %187 : vector<1x1x32xf32> to vector<1x32xf32>
    %189 = vector.broadcast %188 : vector<1x32xf32> to vector<16x32xf32>
    %190 = arith.addf %186, %189 : vector<16x32xf32>
    %191 = arith.addf %135, %190 : vector<16x32xf32>
    %c1_84 = arith.constant 1 : index
    %c0_85 = arith.constant 0 : index
    %c0_86 = arith.constant 0 : index
    %192 = vector.load %arg13[%c1_84, %c0_85, %c0_86] : memref<2x1x32xf32, #tpu.memory_space<vmem>>, vector<1x1x32xf32>
    %193 = vector.shape_cast %192 : vector<1x1x32xf32> to vector<1x32xf32>
    %c1_87 = arith.constant 1 : index
    %c0_88 = arith.constant 0 : index
    %c0_89 = arith.constant 0 : index
    %194 = vector.load %arg14[%c1_87, %c0_88, %c0_89] : memref<2x1x32xf32, #tpu.memory_space<vmem>>, vector<1x1x32xf32>
    %195 = vector.shape_cast %194 : vector<1x1x32xf32> to vector<1x32xf32>
    %cst_90 = arith.constant dense<0.000000e+00> : vector<16xf32>
    %196 = vector.multi_reduction <add>, %191, %cst_90 [1] : vector<16x32xf32> to vector<16xf32>
    %197 = vector.shape_cast %196 : vector<16xf32> to vector<16x1xf32>
    %cst_91 = arith.constant 3.200000e+01 : f32
    %198 = vector.broadcast %cst_91 : f32 to vector<16x1xf32>
    %199 = arith.divf %197, %198 : vector<16x1xf32>
    %200 = vector.broadcast %199 : vector<16x1xf32> to vector<16x32xf32>
    %201 = arith.subf %191, %200 : vector<16x32xf32>
    %202 = arith.mulf %201, %201 : vector<16x32xf32>
    %cst_92 = arith.constant dense<0.000000e+00> : vector<16xf32>
    %203 = vector.multi_reduction <add>, %202, %cst_92 [1] : vector<16x32xf32> to vector<16xf32>
    %204 = vector.shape_cast %203 : vector<16xf32> to vector<16x1xf32>
    %cst_93 = arith.constant 3.200000e+01 : f32
    %205 = vector.broadcast %cst_93 : f32 to vector<16x1xf32>
    %206 = arith.divf %204, %205 : vector<16x1xf32>
    %207 = vector.broadcast %199 : vector<16x1xf32> to vector<16x32xf32>
    %208 = arith.subf %191, %207 : vector<16x32xf32>
    %cst_94 = arith.constant 9.99999974E-6 : f32
    %209 = vector.broadcast %cst_94 : f32 to vector<16x1xf32>
    %210 = arith.addf %206, %209 : vector<16x1xf32>
    %211 = math.rsqrt %210 : vector<16x1xf32>
    %212 = vector.broadcast %211 : vector<16x1xf32> to vector<16x32xf32>
    %213 = arith.mulf %208, %212 : vector<16x32xf32>
    %214 = vector.broadcast %193 : vector<1x32xf32> to vector<16x32xf32>
    %215 = arith.mulf %213, %214 : vector<16x32xf32>
    %216 = vector.broadcast %195 : vector<1x32xf32> to vector<16x32xf32>
    %217 = arith.addf %215, %216 : vector<16x32xf32>
    %218 = arith.truncf %217 : vector<16x32xf32> to vector<16x32xbf16>
    %c1_95 = arith.constant 1 : index
    %c0_96 = arith.constant 0 : index
    %c0_97 = arith.constant 0 : index
    %219 = vector.load %arg9[%c1_95, %c0_96, %c0_97] : memref<2x32x128xbf16, #tpu.memory_space<vmem>>, vector<1x32x128xbf16>
    %220 = vector.shape_cast %219 : vector<1x32x128xbf16> to vector<32x128xbf16>
    %cst_98 = arith.constant dense<0.000000e+00> : vector<16x128xf32>
    %221 = tpu.matmul %218, %220, %cst_98 {dimension_numbers = #tpu.dot_dimension_numbers<[1], [0], [0], [1], [0, 0, 1, 1], [], []>} : vector<16x32xbf16>, vector<32x128xbf16>, vector<16x128xf32> -> vector<16x128xf32>
    %c1_99 = arith.constant 1 : index
    %c0_100 = arith.constant 0 : index
    %c0_101 = arith.constant 0 : index
    %222 = vector.load %arg10[%c1_99, %c0_100, %c0_101] : memref<2x1x128xf32, #tpu.memory_space<vmem>>, vector<1x1x128xf32>
    %223 = vector.shape_cast %222 : vector<1x1x128xf32> to vector<1x128xf32>
    %224 = vector.broadcast %223 : vector<1x128xf32> to vector<16x128xf32>
    %225 = arith.addf %221, %224 : vector<16x128xf32>
    %cst_102 = arith.constant 0.000000e+00 : f32
    %226 = vector.broadcast %cst_102 : f32 to vector<16x128xf32>
    %227 = arith.maximumf %225, %226 : vector<16x128xf32>
    %228 = arith.truncf %227 : vector<16x128xf32> to vector<16x128xbf16>
    %c1_103 = arith.constant 1 : index
    %c0_104 = arith.constant 0 : index
    %c0_105 = arith.constant 0 : index
    %229 = vector.load %arg11[%c1_103, %c0_104, %c0_105] : memref<2x128x32xbf16, #tpu.memory_space<vmem>>, vector<1x128x32xbf16>
    %230 = vector.shape_cast %229 : vector<1x128x32xbf16> to vector<128x32xbf16>
    %cst_106 = arith.constant dense<0.000000e+00> : vector<16x32xf32>
    %231 = tpu.matmul %228, %230, %cst_106 {dimension_numbers = #tpu.dot_dimension_numbers<[1], [0], [0], [1], [0, 0, 1, 1], [], []>} : vector<16x128xbf16>, vector<128x32xbf16>, vector<16x32xf32> -> vector<16x32xf32>
    %c1_107 = arith.constant 1 : index
    %c0_108 = arith.constant 0 : index
    %c0_109 = arith.constant 0 : index
    %232 = vector.load %arg12[%c1_107, %c0_108, %c0_109] : memref<2x1x32xf32, #tpu.memory_space<vmem>>, vector<1x1x32xf32>
    %233 = vector.shape_cast %232 : vector<1x1x32xf32> to vector<1x32xf32>
    %234 = vector.broadcast %233 : vector<1x32xf32> to vector<16x32xf32>
    %235 = arith.addf %231, %234 : vector<16x32xf32>
    %236 = arith.addf %217, %235 : vector<16x32xf32>
    %c1_110 = arith.constant 1 : index
    %c0_111 = arith.constant 0 : index
    %c0_112 = arith.constant 0 : index
    %237 = vector.load %arg15[%c1_110, %c0_111, %c0_112] : memref<2x1x32xf32, #tpu.memory_space<vmem>>, vector<1x1x32xf32>
    %238 = vector.shape_cast %237 : vector<1x1x32xf32> to vector<1x32xf32>
    %c1_113 = arith.constant 1 : index
    %c0_114 = arith.constant 0 : index
    %c0_115 = arith.constant 0 : index
    %239 = vector.load %arg16[%c1_113, %c0_114, %c0_115] : memref<2x1x32xf32, #tpu.memory_space<vmem>>, vector<1x1x32xf32>
    %240 = vector.shape_cast %239 : vector<1x1x32xf32> to vector<1x32xf32>
    %cst_116 = arith.constant dense<0.000000e+00> : vector<16xf32>
    %241 = vector.multi_reduction <add>, %236, %cst_116 [1] : vector<16x32xf32> to vector<16xf32>
    %242 = vector.shape_cast %241 : vector<16xf32> to vector<16x1xf32>
    %cst_117 = arith.constant 3.200000e+01 : f32
    %243 = vector.broadcast %cst_117 : f32 to vector<16x1xf32>
    %244 = arith.divf %242, %243 : vector<16x1xf32>
    %245 = vector.broadcast %244 : vector<16x1xf32> to vector<16x32xf32>
    %246 = arith.subf %236, %245 : vector<16x32xf32>
    %247 = arith.mulf %246, %246 : vector<16x32xf32>
    %cst_118 = arith.constant dense<0.000000e+00> : vector<16xf32>
    %248 = vector.multi_reduction <add>, %247, %cst_118 [1] : vector<16x32xf32> to vector<16xf32>
    %249 = vector.shape_cast %248 : vector<16xf32> to vector<16x1xf32>
    %cst_119 = arith.constant 3.200000e+01 : f32
    %250 = vector.broadcast %cst_119 : f32 to vector<16x1xf32>
    %251 = arith.divf %249, %250 : vector<16x1xf32>
    %252 = vector.broadcast %244 : vector<16x1xf32> to vector<16x32xf32>
    %253 = arith.subf %236, %252 : vector<16x32xf32>
    %cst_120 = arith.constant 9.99999974E-6 : f32
    %254 = vector.broadcast %cst_120 : f32 to vector<16x1xf32>
    %255 = arith.addf %251, %254 : vector<16x1xf32>
    %256 = math.rsqrt %255 : vector<16x1xf32>
    %257 = vector.broadcast %256 : vector<16x1xf32> to vector<16x32xf32>
    %258 = arith.mulf %253, %257 : vector<16x32xf32>
    %259 = vector.broadcast %238 : vector<1x32xf32> to vector<16x32xf32>
    %260 = arith.mulf %258, %259 : vector<16x32xf32>
    %261 = vector.broadcast %240 : vector<1x32xf32> to vector<16x32xf32>
    %262 = arith.addf %260, %261 : vector<16x32xf32>
    %263 = vector.shape_cast %262 : vector<16x32xf32> to vector<1x16x32xf32>
    %cst_121 = arith.constant dense<0.000000e+00> : vector<1x32xf32>
    %264 = vector.multi_reduction <add>, %263, %cst_121 [1] : vector<1x16x32xf32> to vector<1x32xf32>
    %cst_122 = arith.constant 1.600000e+01 : f32
    %265 = vector.broadcast %cst_122 : f32 to vector<1x32xf32>
    %266 = arith.divf %264, %265 : vector<1x32xf32>
    %c0_123 = arith.constant 0 : index
    %c0_124 = arith.constant 0 : index
    %c0_125 = arith.constant 0 : index
    %267 = vector.load %arg17[%c0_123, %c0_124, %c0_125] : memref<1x1x32xf32, #tpu.memory_space<vmem>>, vector<1x1x32xf32>
    %268 = vector.shape_cast %267 : vector<1x1x32xf32> to vector<1x32xf32>
    %269 = vector.shape_cast %266 : vector<1x32xf32> to vector<1x1x32xf32>
    tpu.vector_store %arg17[%c0_123, %c0_124, %c0_125], %269 {strides = array<i32>} : memref<1x1x32xf32, #tpu.memory_space<vmem>>, vector<1x1x32xf32>,
    return
  }
  func.func @transform_0(%arg0: i32) -> (i32, i32, i32) {
    %c0_i32 = arith.constant 0 : i32
    %c0_i32_0 = arith.constant 0 : i32
    %c0_i32_1 = arith.constant 0 : i32
    return %arg0, %c0_i32, %c0_i32_0 : i32, i32, i32
  }
  func.func @transform_1(%arg0: i32) -> (i32, i32) {
    %c0_i32 = arith.constant 0 : i32
    %c0_i32_0 = arith.constant 0 : i32
    %c0_i32_1 = arith.constant 0 : i32
    return %c0_i32, %c0_i32_0 : i32, i32
  }
  func.func @transform_2(%arg0: i32) -> (i32, i32) {
    %c0_i32 = arith.constant 0 : i32
    %c0_i32_0 = arith.constant 0 : i32
    %c0_i32_1 = arith.constant 0 : i32
    return %c0_i32, %c0_i32_0 : i32, i32
  }
  func.func @transform_3(%arg0: i32) -> (i32, i32) {
    %c0_i32 = arith.constant 0 : i32
    %c0_i32_0 = arith.constant 0 : i32
    %c0_i32_1 = arith.constant 0 : i32
    return %c0_i32, %c0_i32_0 : i32, i32
  }
  func.func @transform_4(%arg0: i32) -> (i32, i32, i32) {
    %c0_i32 = arith.constant 0 : i32
    %c0_i32_0 = arith.constant 0 : i32
    %c0_i32_1 = arith.constant 0 : i32
    %c0_i32_2 = arith.constant 0 : i32
    return %c0_i32, %c0_i32_0, %c0_i32_1 : i32, i32, i32
  }
  func.func @transform_5(%arg0: i32) -> (i32, i32, i32) {
    %c0_i32 = arith.constant 0 : i32
    %c0_i32_0 = arith.constant 0 : i32
    %c0_i32_1 = arith.constant 0 : i32
    %c0_i32_2 = arith.constant 0 : i32
    return %c0_i32, %c0_i32_0, %c0_i32_1 : i32, i32, i32
  }
  func.func @transform_6(%arg0: i32) -> (i32, i32, i32) {
    %c0_i32 = arith.constant 0 : i32
    %c0_i32_0 = arith.constant 0 : i32
    %c0_i32_1 = arith.constant 0 : i32
    %c0_i32_2 = arith.constant 0 : i32
    return %c0_i32, %c0_i32_0, %c0_i32_1 : i32, i32, i32
  }
  func.func @transform_7(%arg0: i32) -> (i32, i32, i32) {
    %c0_i32 = arith.constant 0 : i32
    %c0_i32_0 = arith.constant 0 : i32
    %c0_i32_1 = arith.constant 0 : i32
    %c0_i32_2 = arith.constant 0 : i32
    return %c0_i32, %c0_i32_0, %c0_i32_1 : i32, i32, i32
  }
  func.func @transform_8(%arg0: i32) -> (i32, i32, i32) {
    %c0_i32 = arith.constant 0 : i32
    %c0_i32_0 = arith.constant 0 : i32
    %c0_i32_1 = arith.constant 0 : i32
    %c0_i32_2 = arith.constant 0 : i32
    return %c0_i32, %c0_i32_0, %c0_i32_1 : i32, i32, i32
  }
  func.func @transform_9(%arg0: i32) -> (i32, i32, i32) {
    %c0_i32 = arith.constant 0 : i32
    %c0_i32_0 = arith.constant 0 : i32
    %c0_i32_1 = arith.constant 0 : i32
    %c0_i32_2 = arith.constant 0 : i32
    return %c0_i32, %c0_i32_0, %c0_i32_1 : i32, i32, i32
  }
  func.func @transform_10(%arg0: i32) -> (i32, i32, i32) {
    %c0_i32 = arith.constant 0 : i32
    %c0_i32_0 = arith.constant 0 : i32
    %c0_i32_1 = arith.constant 0 : i32
    %c0_i32_2 = arith.constant 0 : i32
    return %c0_i32, %c0_i32_0, %c0_i32_1 : i32, i32, i32
  }
  func.func @transform_11(%arg0: i32) -> (i32, i32, i32) {
    %c0_i32 = arith.constant 0 : i32
    %c0_i32_0 = arith.constant 0 : i32
    %c0_i32_1 = arith.constant 0 : i32
    %c0_i32_2 = arith.constant 0 : i32
    return %c0_i32, %c0_i32_0, %c0_i32_1 : i32, i32, i32
  }
  func.func @transform_12(%arg0: i32) -> (i32, i32, i32) {
    %c0_i32 = arith.constant 0 : i32
    %c0_i32_0 = arith.constant 0 : i32
    %c0_i32_1 = arith.constant 0 : i32
    %c0_i32_2 = arith.constant 0 : i32
    return %c0_i32, %c0_i32_0, %c0_i32_1 : i32, i32, i32
  }
  func.func @transform_13(%arg0: i32) -> (i32, i32, i32) {
    %c0_i32 = arith.constant 0 : i32
    %c0_i32_0 = arith.constant 0 : i32
    %c0_i32_1 = arith.constant 0 : i32
    %c0_i32_2 = arith.constant 0 : i32
    return %c0_i32, %c0_i32_0, %c0_i32_1 : i32, i32, i32
  }
  func.func @transform_14(%arg0: i32) -> (i32, i32, i32) {
    %c0_i32 = arith.constant 0 : i32
    %c0_i32_0 = arith.constant 0 : i32
    %c0_i32_1 = arith.constant 0 : i32
    %c0_i32_2 = arith.constant 0 : i32
    return %c0_i32, %c0_i32_0, %c0_i32_1 : i32, i32, i32
  }
  func.func @transform_15(%arg0: i32) -> (i32, i32, i32) {
    %c0_i32 = arith.constant 0 : i32
    %c0_i32_0 = arith.constant 0 : i32
    %c0_i32_1 = arith.constant 0 : i32
    %c0_i32_2 = arith.constant 0 : i32
    return %c0_i32, %c0_i32_0, %c0_i32_1 : i32, i32, i32
  }
  func.func @transform_16(%arg0: i32) -> (i32, i32, i32) {
    %c0_i32 = arith.constant 0 : i32
    %c0_i32_0 = arith.constant 0 : i32
    %c0_i32_1 = arith.constant 0 : i32
    return %arg0, %c0_i32, %c0_i32_0 : i32, i32, i32
  }
}

</mosaic_0001>

<bundles_post_ra>
// kernel: tpu_custom_call.1
= control target key start
LH: loop header
LB: loop body
LE: loop exit
PB: predicated region body
PF: predicated region fallthrough
CT: control target
= control target key end

     0   :  { %s3052_s0 = inlined_call_operand.vmem [shape: bf16[2,16,16], index: 0, kind: input, shape index: {}]   ;;  %s3053_s1 = inlined_call_operand.vmem [shape: f32[16,32], index: 1, kind: input, shape index: {}]   ;;  %s3054_s2 = inlined_call_operand.vmem [shape: bf16[16,32], index: 2, kind: input, shape index: {}]   ;;  %s3055_s3 = inlined_call_operand.vmem [shape: f32[1,32], index: 3, kind: input, shape index: {}]   ;;  %s3056_s4 = inlined_call_operand.vmem [shape: bf16[2,32,96], index: 4, kind: input, shape index: {}]   ;;  %s3057_s5 = inlined_call_operand.vmem [shape: f32[2,1,96], index: 5, kind: input, shape index: {}]   ;;  %s3058_s6 = inlined_call_operand.vmem [shape: bf16[2,32,32], index: 6, kind: input, shape index: {}]   ;;  %s3059_s7 = inlined_call_operand.vmem [shape: f32[2,1,32], index: 7, kind: input, shape index: {}]   ;;  %s3060_s8 = inlined_call_operand.vmem [shape: bf16[2,32,128], index: 8, kind: input, shape index: {}]   ;;  %s3061_s9 = inlined_call_operand.vmem [shape: f32[2,1,128], index: 9, kind: input, shape index: {}]   ;;  %s3062_s10 = inlined_call_operand.vmem [shape: bf16[2,128,32], index: 10, kind: input, shape index: {}]   ;;  %s3063_s11 = inlined_call_operand.vmem [shape: f32[2,1,32], index: 11, kind: input, shape index: {}]   ;;  %s3064_s12 = inlined_call_operand.vmem [shape: f32[2,1,32], index: 12, kind: input, shape index: {}]   ;;  %s3065_s13 = inlined_call_operand.vmem [shape: f32[2,1,32], index: 13, kind: input, shape index: {}]   ;;  %s3066_s14 = inlined_call_operand.vmem [shape: f32[2,1,32], index: 14, kind: input, shape index: {}]   ;;  %s3067_s15 = inlined_call_operand.vmem [shape: f32[2,1,32], index: 15, kind: input, shape index: {}]   ;;  %s3068_s16 = inlined_call_operand.hbm [shape: f32[2,1,32], index: 16, kind: output, shape index: {}]  }
   0x1   :  { %3075 = sst [smem:[#allocation7_spill]] %s3052_s0 }
   0x2   :  { %3076 = sst [smem:[#allocation8_spill]] %s3053_s1 }
   0x3   :  { %3077 = sst [smem:[#allocation9_spill]] %s3054_s2 }
   0x4   :  { %3078 = sst [smem:[#allocation10_spill]] %s3055_s3 }
   0x5   :  { %3079 = sst [smem:[#allocation11_spill]] %s3056_s4 }
   0x6   :  { %21 = vsyncpa [#allocation3], 0 }
   0x7   :  { %23 = vsyncpa [#allocation3 + $0x1], 0  ;;  %s2663_s21 = smov 0   ;;  %s2665_s22 = smov 0  }
   0x8   :  { %s2667_s23 = smov 0   ;;  %s2669_s24 = smov 0  }
   0x9 LB: > { %3080 = sst [smem:[#allocation5_spill]] %s2565_s23  ;;  %s2684_s25 = sadd.s32 4294967295, %s2569_s24   ;;  %s2569_s24 = sphi %s2669_s24, %s3096_s24   ;;  %s2565_s23 = sphi %s2667_s23, %s3093_s23   ;;  %s2561_s22 = sphi %s2665_s22, %s3095_s22   ;;  %s2557_s21 = sphi %s2663_s21, %s3094_s21  }
   0xa   : > { %s2052_s26 = sadd.s32 4294967294, %s2569_s24   ;;  %s2688_s27 = sadd.s32 1, %s2569_s24  }
   0xb   : > { %s377_s28 = sadd.s32 1, %s2565_s23  ;;  %s374_s29 = ssub.s32 %s2569_s24, %s2688_s27 }
   0xc   : > { %p387_p0 = scmp.ne.s32.totalorder %s2565_s23, %s2561_s22  ;;  %p375_p1 = scmp.eq.s32.totalorder %s374_s29, 0 }
   0xd   : > { %p388_p2 = scmp.eq.s32.totalorder %s2684_s25, 1  ;;  %p393_p3 = scmp.ne.s32.totalorder %s2561_s22, %s2557_s21 }
   0xe   : > { %p394_p4 = scmp.eq.s32.totalorder %s2052_s26, 1  ;;  %p2055_p7 = scmp.ge.s32.totalorder %s2569_s24, 1 }
   0xf   : > { %s2699_s30 = scalar_select %p375_p1, %s2565_s23, %s377_s28  }
  0x10   : > { %p2701_p5 = por %p388_p2, %p387_p0  ;;  %p2705_p6 = por %p394_p4, %p393_p3 }
  0x11   : > { %3081 = sst [smem:[#allocation6_spill]] %s2699_s30  ;;  %p465_p8 = scmp.lt.s32.totalorder %s2569_s24, 3 }
  0x13   : > { %p466_p9 = pnand %p2055_p7, %p465_p8 }
  0x14   : > { %s3084_s2 = sld [smem:[#allocation9_spill]] (!%p466_p9)  ;;  %p514_p10 = scmp.lt.s32.totalorder (!%p466_p9), %s2684_s25, 1 }
  0x15   : > { %469 = sbr.rel (%p466_p9) target bundleno = 4952 (0x1358), region = 84  ;;  %s3085_s18 = sld [smem:[#allocation7_spill]] (!%p466_p9) }
  0x16   : > { %s3086_s4 = sld [smem:[#allocation11_spill]] (!%p466_p9)  ;;  %s3071_s28 = smov (!%p466_p9), 64  }
  0x17   : > { %s3087_s3 = sld [smem:[#allocation10_spill]] (!%p466_p9)  ;;  %s3070_s23 = smov (!%p466_p9), 16  }
  0x18   : > { %s3088_s1 = sld [smem:[#allocation8_spill]] (!%p466_p9) }
  0x1a   : > { %v2431_v0 = vld [vmem:[%s3084_s2] sm:$0xff]   ;;  %v2571_v1 = vmov 0.0   ;;  %vm2572_vm0 = vmmov 0   ;;  %s515_s20 = scalar_select %p514_p10, %s2684_s25, 1  ;;  %vm542_vm1 = vcmask 130048   ;;  %vm615_vm2 = vcmask 261120  }
  0x1b   : > { %2214 = vmatprep.subr.bf16.mxu0 %v2571_v1  ;;  %2246 = vmatprep.subr.bf16.mxu1 %v2571_v1  ;;  %v2062_v17 = vld [vmem:[%s3057_s5] ss:$0 sm:$0xff]  ;;  %vm1982_vm3 = vcmask 253952  }
  0x1c   : > { %2215 = vmatpush3.bf16.msra.mxu0 %v2431_v0  ;;  %2216 = vmatprep.mubr.msk.bf16.mxu0 %vm2572_vm0, %v2571_v1  ;;  %s2159_s26 = sshll.u32 %s515_s20, 3  ;;  %v2433_v3 = vld [vmem:[%s3086_s4 + $0x8] sm:$0xff]   ;;  %v2434_v4 = vld [vmem:[%s3086_s4] sm:$0xff]   ;;  %s2573_s20 = smov 112  }
  0x1d   : > { %2220 = vmatprep.subr.bf16.mxu0 %v2571_v1  ;;  %2248 = vmatprep.mubr.msk.bf16.mxu1 %vm2572_vm0, %v2571_v1  ;;  %s518_s19 = scalar_lea.vmem %s3085_s18, %s2159_s26  ;;  %v2058_v5 = vld [vmem:[%s3087_s3] ss:$0 sm:$0xff]  ;;  %s3073_s26 = smov 96  }
  0x1e   : > { %v2432_v2 = vld [vmem:[%s518_s19] sm:$0xff]   ;;  %v588_v11 = vld [vmem:[%s3088_s1 + $0x8] sm:$0xff]  ;;  %s3091_s19 = smov 16   ;;  %s512_s18 = sand.u32 1, %s2561_s22  }
  0x1f   : > { %2217 = vmatmul.mubr.msk.bf16.vlgmr.msra.gmra.mxu0 %vm542_vm1, %v2432_v2  ;;  %v587_v9 = vld [vmem:[%s3088_s1] sm:$0xff]  ;;  %s1985_s2 = scalar_lea.sflag [#allocation3], %s512_s18  ;;  %s2577_s1 = smov [#allocation2]  }
  0x20   : > { %2224 = vmatprep.mubr.msk.bf16.mxu0 %vm2572_vm0, %v2571_v1  ;;  %2221 = vmatpush3.bf16.msra.mxu0 %v2433_v3  ;;  %s2513_s3 = sshll.u32 %s2577_s1, 4  ;;  %s2514_s3 = int_to_ptr.vmem [resolvable:$false] %s2513_s3 }
  0x21   : > { %2222 = vmatprep.subr.bf16.mxu0 %v2571_v1 }
  0x24   : > { %2223 = vmatpush3.bf16.msra.mxu0 %v2434_v4 }
  0x25   : > { %2228 = vmatprep.subr.bf16.mxu0 %v2571_v1 }
  0xdf   : > { %v580_v6 = vpop.f32.mrf.mxu0 }
  0xe0   : > { %v581_v8 = vadd.f32 %v2058_v5, %v580_v6 }
  0xe1   : > { %v2218_v7 = vpop.f32.mrf.mxu0 }
  0xe2   : > { %v2746_v14 = vadd.f32 %v587_v9, %v581_v8 }
  0xe3   : > { %v583_v10 = vpop.f32.mrf.mxu0 }
  0xe4   : > { %v584_v12 = vadd.f32 %v2058_v5, %v583_v10 }
  0xe5   : > { %v2219_v13 = vpop.f32.mrf.mxu0 }
  0xe6   : > { %v2748_v15 = vadd.f32 %v588_v11, %v584_v12 }
  0xe8   : > { %v591_v16 = vpack.c.bf16 %v2748_v15, %v2746_v14 }
  0xea   : > { %2225 = vmatmul.mubr.msk.bf16.vlgmr.msra.gmra.mxu0 %vm615_vm2, %v591_v16 }
  0xeb   : > { %2230 = vmatprep.mubr.msk.bf16.mxu0 %vm2572_vm0, %v2571_v1 }
 0x1aa   : > { %v653_v18 = vpop.f32.mrf.mxu0 }
 0x1ab   : > { %v654_v20 = vadd.f32 %v2062_v17, %v653_v18 }
 0x1ac   : > { %v2226_v19 = vpop.f32.mrf.mxu0 }
 0x1ad   : > { %v660_v24 = vmul.f32 0.25, %v654_v20 }
 0x1ae   : > { %v656_v21 = vpop.f32.mrf.mxu0 }
 0x1af   : > { %v657_v22 = vadd.f32 %v2062_v17, %v656_v21  ;;  %v2435_v17 = vld [vmem:[%s3058_s6 + $0x8] sm:$0xff]  }
 0x1b0   : > { %v2227_v23 = vpop.f32.mrf.mxu0 }
 0x1b1   : > { %v661_v25 = vmul.f32 0.25, %v657_v22  ;;  %v2401_v26 = vpack.i.bf16 %v657_v22, %v654_v20  ;;  %v680_v29 = vpack.c.bf16 %v657_v22, %v654_v20  ;;  %v2436_v20 = vld [vmem:[%s3058_s6] sm:$0xff]  }
 0x1b3   : > { %v670_v27 = vpack.c.bf16 %v661_v25, %v660_v24  ;;  %2402 = vrot.lane.b32.xlu0 %v2401_v26, %s2573_s20  ;;  %v2406_v28 = vpack.i.bf16 %v661_v25, %v660_v24 }
 0x1b7   : > { %683 = vrot.lane.b32.xlu0 %v680_v29, %s3073_s26 }
 0x225   : > { %v2403_v30 = vpop.permute.xlu0 %2402 }
 0x226   : > { %v2405_v31 = vunpack.i.h.bf16 %v2403_v30  ;;  %v2404_v32 = vunpack.i.l.bf16 %v2403_v30 }
 0x228   : > { %v681_v33 = vpack.c.bf16 %v2405_v31, %v2404_v32 }
 0x229   : > { %v684_v34 = vpop.permute.xlu0 %683 }
 0x22a   : > { %v689_v35 = vsel %vm542_vm1, %v684_v34, 0  ;;  %733 = vrot.lane.b32.xlu1 %v681_v33, %s3073_s26 }
 0x22b   : > { %2229 = vmatpush3.bf16.xpose.msra.mxu0 %v689_v35 }
 0x22c   : > { %2234 = vmatprep.subr.bf16.mxu0 %v2571_v1 }
 0x22e   : > { %2407 = vrot.lane.b32.xlu1 %v2406_v28, %s2573_s20 }
 0x232   : > { %2231 = vmatmul.mubr.msk.bf16.vlgmr.msra.gmra.mxu0 %vm542_vm1, %v670_v27 }
 0x233   : > { %2236 = vmatprep.mubr.msk.bf16.mxu0 %vm2572_vm0, %v2571_v1 }
 0x29c   : > { %v734_v36 = vpop.permute.xlu1 %733 }
 0x29d   : > { %v739_v37 = vsel %vm542_vm1, %v734_v36, 0 }
 0x29e   : > { %2235 = vmatpush3.bf16.xpose.msra.mxu0 %v739_v37 }
 0x29f   : > { %2240 = vmatprep.subr.bf16.mxu0 %v2571_v1 }
 0x2a0   : > { %v2408_v38 = vpop.permute.xlu1 %2407 }
 0x2a1   : > { %v2410_v39 = vunpack.i.h.bf16 %v2408_v38  ;;  %v2409_v40 = vunpack.i.l.bf16 %v2408_v38 }
 0x2a3   : > { %v671_v41 = vpack.c.bf16 %v2410_v39, %v2409_v40 }
 0x2a5   : > { %2237 = vmatmul.mubr.msk.bf16.vlgmr.msra.gmra.mxu0 %vm542_vm1, %v671_v41 }
 0x2a6   : > { %2242 = vmatprep.mubr.msk.bf16.mxu0 %vm2572_vm0, %v2571_v1 }
 0x2f2   : > { %v725_v42 = vpop.f32.mrf.mxu0 }
 0x2f3   : > { %v782_v52 = vsel %vm542_vm1, %v725_v42, -inf }
 0x2f4   : > { %v2232_v43 = vpop.f32.mrf.mxu0 }
 0x2f6   : > { %v728_v44 = vpop.f32.mrf.mxu0 }
 0x2f7   : > { %v785_v53 = vsel %vm542_vm1, %v728_v44, -inf }
 0x2f8   : > { %v2233_v45 = vpop.f32.mrf.mxu0 }
 0x365   : > { %v775_v46 = vpop.f32.mrf.mxu0 }
 0x366   : > { %v788_v47 = vsel %vm542_vm1, %v775_v46, -inf }
 0x367   : > { %789 = vmax.xlane.f32.xlu0 %v788_v47  ;;  %v2238_v48 = vpop.f32.mrf.mxu0 }
 0x369   : > { %v778_v49 = vpop.f32.mrf.mxu0 }
 0x36a   : > { %v791_v50 = vsel %vm542_vm1, %v778_v49, -inf }
 0x36b   : > { %792 = vmax.xlane.f32.xlu1 %v791_v50  ;;  %v2239_v51 = vpop.f32.mrf.mxu0 }
 0x36f   : > { %783 = vmax.xlane.f32.xlu1 %v782_v52 }
 0x373   : > { %786 = vmax.xlane.f32.xlu1 %v785_v53 }
 0x37d   : > { %867 = vrot.lane.b32.xlu0 %v681_v33, %s3071_s28 }
 0x384   : > { %820 = vrot.lane.b32.xlu1 %v680_v29, %s3071_s28  ;;  %s3089_s28 = smov 96  }
 0x3f0   : > { %v790_v54 = vpop.xlane.xlu0 %789 }
 0x3f1   : > { %v796_v55 = vsub.f32 %v775_v46, %v790_v54  ;;  %v2070_v46 = vld [vmem:[%s3059_s7] ss:$0 sm:$0xff] }
 0x3f3   : > { %v802_v56 = vmul.f32 1.442695, %v796_v55 }
 0x3f4   : > { %v868_v57 = vpop.permute.xlu0 %867  ;;  %v793_v58 = vpop.xlane.xlu1 %792 }
 0x3f5   : > { %2461 = vpow2.f32 %v802_v56  ;;  %v797_v59 = vsub.f32 %v778_v49, %v793_v58  ;;  %2247 = vmatpush3.bf16.msra.mxu1 %v868_v57 }
 0x3f6   : > { %2260 = vmatprep.subr.bf16.mxu1 %v2571_v1 }
 0x3f7   : > { %v804_v60 = vmul.f32 1.442695, %v797_v59 }
 0x3f8   : > { %v784_v61 = vpop.xlane.xlu1 %783 }
 0x3f9   : > { %2463 = vpow2.f32 %v804_v60  ;;  %v794_v62 = vsub.f32 %v725_v42, %v784_v61 }
 0x3fb   : > { %v798_v63 = vmul.f32 1.442695, %v794_v62 }
 0x3fc   : > { %v787_v0 = vpop.xlane.xlu1 %786 }
 0x3fd   : > { %2465 = vpow2.f32 %v798_v63  ;;  %v795_v2 = vsub.f32 %v728_v44, %v787_v0 }
 0x3ff   : > { %v800_v3 = vmul.f32 1.442695, %v795_v2 }
 0x400   : > { %v821_v4 = vpop.permute.xlu1 %820 }
 0x401   : > { %2467 = vpow2.f32 %v800_v3  ;;  %2241 = vmatpush3.bf16.msra.mxu0 %v821_v4  ;;  %v2438_v3 = vld [vmem:[%s3060_s8] sm:$0xff]   ;;  %v2439_v4 = vld [vmem:[%s3062_s10 + $0x38] sm:$0xff]  }
 0x402   : > { %v2462_v5 = vpop.eup %2461  ;;  %2252 = vmatprep.subr.bf16.mxu0 %v2571_v1 }
 0x403   : > { %v812_v6 = vsel %vm542_vm1, %v2462_v5, 0.0 }
 0x404   : > { %813 = vadd.xlane.f32.xlu0 %v812_v6  ;;  %v2441_v6 = vld [vmem:[%s3062_s10 + $0x28] sm:$0xff]  }
 0x406   : > { %v2464_v7 = vpop.eup %2463 }
 0x407   : > { %v815_v8 = vsel %vm542_vm1, %v2464_v7, 0.0  ;;  %v819_v9 = vpack.c.bf16 %v2464_v7, %v2462_v5  ;;  %v2440_v5 = vld [vmem:[%s3062_s10 + $0x30] sm:$0xff]   ;;  %v2442_v7 = vld [vmem:[%s3062_s10 + $0x20] sm:$0xff]  }
 0x408   : > { %816 = vadd.xlane.f32.xlu1 %v815_v8  ;;  %v2443_v8 = vld [vmem:[%s3062_s10 + $0x18] sm:$0xff]  }
 0x409   : > { %2249 = vmatmul.mubr.msk.bf16.vlgmr.msra.gmra.mxu1 %vm542_vm1, %v819_v9 }
 0x40a   : > { %v2466_v10 = vpop.eup %2465  ;;  %2264 = vmatprep.mubr.msk.bf16.mxu1 %vm2572_vm0, %v2571_v1 }
 0x40b   : > { %v806_v11 = vsel %vm542_vm1, %v2466_v10, 0.0 }
 0x40c   : > { %807 = vadd.xlane.f32.xlu0 %v806_v11 }
 0x40e   : > { %v2468_v12 = vpop.eup %2467 }
 0x40f   : > { %v809_v13 = vsel %vm542_vm1, %v2468_v12, 0.0  ;;  %v818_v16 = vpack.c.bf16 %v2468_v12, %v2466_v10 }
 0x410   : > { %810 = vadd.xlane.f32.xlu0 %v809_v13 }
 0x411   : > { %2243 = vmatmul.mubr.msk.bf16.vlgmr.msra.gmra.mxu0 %vm542_vm1, %v818_v16 }
 0x412   : > { %2256 = vmatprep.mubr.msk.bf16.mxu0 %vm2572_vm0, %v2571_v1  ;;  %2253 = vmatpush3.bf16.msra.mxu0 %v2435_v17 }
 0x413   : > { %2254 = vmatprep.subr.bf16.mxu0 %v2571_v1 }
 0x416   : > { %2255 = vmatpush3.bf16.msra.mxu0 %v2436_v20 }
 0x417   : > { %2268 = vmatprep.subr.bf16.mxu0 %v2571_v1 }
 0x48d   : > { %v814_v18 = vpop.xlane.xlu0 %813 }
 0x48e   : > { %2469 = vrcp.f32 %v814_v18 }
 0x491   : > { %v817_v19 = vpop.xlane.xlu1 %816 }
 0x492   : > { %2471 = vrcp.f32 %v817_v19  ;;  %v2074_v19 = vld [vmem:[%s3064_s12] ss:$0 sm:$0xff] }
 0x495   : > { %v808_v34 = vpop.xlane.xlu0 %807 }
 0x496   : > { %2473 = vrcp.f32 %v808_v34 }
 0x499   : > { %v811_v35 = vpop.xlane.xlu0 %810 }
 0x49a   : > { %2475 = vrcp.f32 %v811_v35 }
 0x49b   : > { %v2470_v23 = vpop.eup %2469 }
 0x49f   : > { %v2472_v24 = vpop.eup %2471 }
 0x4a3   : > { %v2474_v36 = vpop.eup %2473 }
 0x4a7   : > { %v2476_v37 = vpop.eup %2475 }
 0x4c9   : > { %v907_v21 = vpop.f32.mrf.mxu1 }
 0x4ca   : > { %v920_v26 = vmul.f32 %v2470_v23, %v907_v21  ;;  %v2075_v23 = vld [vmem:[%s3065_s13] ss:$0 sm:$0xff] }
 0x4cb   : > { %v2250_v22 = vpop.f32.mrf.mxu1 }
 0x4cd   : > { %v910_v25 = vpop.f32.mrf.mxu1 }
 0x4ce   : > { %v921_v27 = vmul.f32 %v2472_v24, %v910_v25 }
 0x4cf   : > { %v2251_v28 = vpop.f32.mrf.mxu1 }
 0x4d0   : > { %v2411_v29 = vpack.i.bf16 %v921_v27, %v920_v26  ;;  %v2444_v28 = vld [vmem:[%s3062_s10 + $0x10] sm:$0xff]  }
 0x4d1   : > { %v860_v30 = vpop.f32.mrf.mxu0 }
 0x4d2   : > { %2412 = vrot.lane.b32.xlu0 %v2411_v29, %s3070_s23  ;;  %v918_v39 = vmul.f32 %v2474_v36, %v860_v30  ;;  %v2445_v29 = vld [vmem:[%s3062_s10 + $0x8] sm:$0xff]   ;;  %v2446_v30 = vld [vmem:[%s3062_s10] sm:$0xff]   ;;  %s513_s23 = scalar_lea.vmem [#allocation2], %s512_s18 }
 0x4d3   : > { %v2244_v31 = vpop.f32.mrf.mxu0  ;;  %s1997_s26 = sshll.u32 %s513_s23, 4  ;;  %s1998_s26 = int_to_ptr.vmem [resolvable:$true] %s1997_s26 }
 0x4d4   : > { %v2076_v31 = vld [vmem:[%s3061_s9] ss:$0 sm:$0xff]  ;;  %s2509_s30 = scalar_lea.vmem %s1998_s26, 16  ;;  %p2516_p0 = scmp.lt.s32.totalorder %s1998_s26, %s2514_s3 }
 0x4d5   : > { %v863_v32 = vpop.f32.mrf.mxu0  ;;  %p2510_p11 = scmp.ne.s32.totalorder %s1998_s26, %s2509_s30 }
 0x4d6   : > { %v919_v40 = vmul.f32 %v2476_v37, %v863_v32 }
 0x4d7   : > { %v2245_v33 = vpop.f32.mrf.mxu0  ;;  %p2511_p12 = pnand %p2510_p11, %p2701_p5 }
 0x4d9   : > { %p2512_p13 = pneg %p2511_p12 }
 0x544   : > { %v2413_v38 = vpop.permute.xlu0 %2412 }
 0x545   : > { %v2415_v41 = vunpack.i.h.bf16 %v2413_v38  ;;  %v2414_v42 = vunpack.i.l.bf16 %v2413_v38 }
 0x547   : > { %v930_v43 = vsel %vm542_vm1, %v918_v39, %v2414_v42  ;;  %v931_v44 = vsel %vm542_vm1, %v919_v40, %v2415_v41  ;;  %v2080_v41 = vld [vmem:[%s3063_s11] ss:$0 sm:$0xff] }
 0x548   : > { %v932_v45 = vpack.c.bf16 %v931_v44, %v930_v43 }
 0x54a   : > { %2257 = vmatmul.mubr.msk.bf16.vlgmr.msra.gmra.mxu0 %vm615_vm2, %v932_v45 }
 0x54b   : > { %2284 = vmatprep.mubr.msk.bf16.mxu0 %vm2572_vm0, %v2571_v1  ;;  %2269 = vmatpush3.bf16.msra.mxu0 %v2439_v4 }
 0x54c   : > { %2270 = vmatprep.subr.bf16.mxu0 %v2571_v1 }
 0x54f   : > { %2271 = vmatpush3.bf16.msra.mxu0 %v2440_v5 }
 0x550   : > { %2272 = vmatprep.subr.bf16.mxu0 %v2571_v1 }
 0x553   : > { %2273 = vmatpush3.bf16.msra.mxu0 %v2441_v6 }
 0x554   : > { %2274 = vmatprep.subr.bf16.mxu0 %v2571_v1 }
 0x557   : > { %2275 = vmatpush3.bf16.msra.mxu0 %v2442_v7  ;;  %v2089_v7 = vld [vmem:[%s3066_s14] ss:$0 sm:$0xff] }
 0x558   : > { %2276 = vmatprep.subr.bf16.mxu0 %v2571_v1 }
 0x55b   : > { %2277 = vmatpush3.bf16.msra.mxu0 %v2443_v8 }
 0x55c   : > { %2278 = vmatprep.subr.bf16.mxu0 %v2571_v1 }
 0x55f   : > { %2279 = vmatpush3.bf16.msra.mxu0 %v2444_v28 }
 0x560   : > { %2280 = vmatprep.subr.bf16.mxu0 %v2571_v1 }
 0x563   : > { %2281 = vmatpush3.bf16.msra.mxu0 %v2445_v29 }
 0x564   : > { %2282 = vmatprep.subr.bf16.mxu0 %v2571_v1 }
 0x567   : > { %2283 = vmatpush3.bf16.msra.mxu0 %v2446_v30 }
 0x568   : > { %2314 = vmatprep.subr.bf16.mxu0 %v2571_v1 }
 0x60a   : > { %v993_v47 = vpop.f32.mrf.mxu0 }
 0x60b   : > { %v994_v48 = vadd.f32 %v2070_v46, %v993_v47 }
 0x60c   : > { %v2258_v49 = vpop.f32.mrf.mxu0 }
 0x60d   : > { %v1000_v50 = vadd.f32 %v994_v48, %v2746_v14 }
 0x60e   : > { %v996_v51 = vpop.f32.mrf.mxu0 }
 0x60f   : > { %v997_v52 = vadd.f32 %v2070_v46, %v996_v51  ;;  %v1004_v53 = vsel %vm615_vm2, %v1000_v50, 0.0 }
 0x610   : > { %1005 = vadd.xlane.f32.xlu1 %v1004_v53  ;;  %v2259_v54 = vpop.f32.mrf.mxu0 }
 0x611   : > { %v1001_v55 = vadd.f32 %v997_v52, %v2748_v15  ;;  %v2437_v15 = vld [vmem:[%s3060_s8 + $0x8] sm:$0xff]  }
 0x612   : > { %2261 = vmatpush3.bf16.msra.mxu1 %v2437_v15 }
 0x613   : > { %v1007_v56 = vsel %vm615_vm2, %v1001_v55, 0.0  ;;  %2262 = vmatprep.subr.bf16.mxu1 %v2571_v1 }
 0x614   : > { %1008 = vadd.xlane.f32.xlu1 %v1007_v56 }
 0x616   : > { %2263 = vmatpush3.bf16.msra.mxu1 %v2438_v3 }
 0x617   : > { %2288 = vmatprep.subr.bf16.mxu1 %v2571_v1 }
 0x699   : > { %v1006_v57 = vpop.xlane.xlu1 %1005 }
 0x69a   : > { %v1011_v58 = vmul.f32 0.03125, %v1006_v57 }
 0x69c   : > { %v1013_v59 = vsub.f32 %v1000_v50, %v1011_v58 }
 0x69d   : > { %v1009_v60 = vpop.xlane.xlu1 %1008 }
 0x69e   : > { %v1012_v61 = vmul.f32 0.03125, %v1009_v60  ;;  %v1015_v62 = vmul.f32 %v1013_v59, %v1013_v59 }
 0x6a0   : > { %v1014_v63 = vsub.f32 %v1001_v55, %v1012_v61  ;;  %v1017_v14 = vsel %vm615_vm2, %v1015_v62, 0.0  ;;  %v2447_v62 = vld [vmem:[%s3086_s4 + $0x18] sm:$0xff]  }
 0x6a1   : > { %1018 = vadd.xlane.f32.xlu1 %v1017_v14 }
 0x6a2   : > { %v1016_v0 = vmul.f32 %v1014_v63, %v1014_v63 }
 0x6a4   : > { %v1020_v2 = vsel %vm615_vm2, %v1016_v0, 0.0 }
 0x6a5   : > { %1021 = vadd.xlane.f32.xlu1 %v1020_v2 }
 0x72a   : > { %v1019_v9 = vpop.xlane.xlu1 %1018 }
 0x72b   : > { %v1023_v10 = vmul.f32 0.03125, %v1019_v9 }
 0x72d   : > { %v1025_v11 = vadd.f32 1e-05, %v1023_v10 }
 0x72e   : > { %v1022_v12 = vpop.xlane.xlu1 %1021 }
 0x72f   : > { %2477 = vrsqrt.f32 %v1025_v11  ;;  %v1024_v13 = vmul.f32 0.03125, %v1022_v12  ;;  %v2090_v11 = vld [vmem:[%s3067_s15] ss:$0 sm:$0xff] }
 0x731   : > { %v1026_v16 = vadd.f32 1e-05, %v1024_v13 }
 0x733   : > { %2479 = vrsqrt.f32 %v1026_v16 }
 0x73c   : > { %v2478_v17 = vpop.eup %2477 }
 0x73d   : > { %v1029_v18 = vmul.f32 %v2478_v17, %v1013_v59 }
 0x73f   : > { %v1037_v22 = vmul.f32 %v2074_v19, %v1029_v18  ;;  %v2096_v18 = vld [vmem:[%s3057_s5 + $0x1] ss:$0 sm:$0xff] }
 0x740   : > { %v2480_v20 = vpop.eup %2479 }
 0x741   : > { %v1030_v21 = vmul.f32 %v2480_v20, %v1014_v63  ;;  %v1045_v25 = vadd.f32 %v2075_v23, %v1037_v22  ;;  %v2448_v63 = vld [vmem:[%s3086_s4 + $0x10] sm:$0xff]  }
 0x743   : > { %v1038_v24 = vmul.f32 %v2074_v19, %v1030_v21 }
 0x745   : > { %v1046_v26 = vadd.f32 %v2075_v23, %v1038_v24 }
 0x747   : > { %v1047_v27 = vpack.c.bf16 %v1046_v26, %v1045_v25 }
 0x749   : > { %2265 = vmatmul.mubr.msk.bf16.vlgmr.msra.gmra.mxu1 %vm615_vm2, %v1047_v27 }
 0x74a   : > { %2292 = vmatprep.mubr.msk.bf16.mxu1 %vm2572_vm0, %v2571_v1  ;;  %2289 = vmatpush3.bf16.msra.mxu1 %v2447_v62 }
 0x74b   : > { %2290 = vmatprep.subr.bf16.mxu1 %v2571_v1 }
 0x74e   : > { %2291 = vmatpush3.bf16.msra.mxu1 %v2448_v63 }
 0x74f   : > { %2296 = vmatprep.subr.bf16.mxu1 %v2571_v1 }
 0x809   : > { %v1108_v32 = vpop.f32.mrf.mxu1 }
 0x80a   : > { %v1109_v34 = vadd.f32 %v2076_v31, %v1108_v32 }
 0x80b   : > { %v2266_v33 = vpop.f32.mrf.mxu1 }
 0x80c   : > { %v1115_v38 = vmax.f32 %v1109_v34, 0.0 }
 0x80d   : > { %v1111_v35 = vpop.f32.mrf.mxu1 }
 0x80e   : > { %v1112_v36 = vadd.f32 %v2076_v31, %v1111_v35 }
 0x80f   : > { %v2267_v37 = vpop.f32.mrf.mxu1 }
 0x810   : > { %v1116_v39 = vmax.f32 %v1112_v36, 0.0 }
 0x812   : > { %v1117_v40 = vpack.c.bf16 %v1116_v39, %v1115_v38 }
 0x814   : > { %2285 = vmatmul.mubr.bf16.vlgmr.msra.gmra.mxu0 %v1117_v40 }
 0x815   : > { %2316 = vmatprep.mubr.msk.bf16.mxu0 %vm2572_vm0, %v2571_v1 }
 0x8d4   : > { %v1223_v42 = vpop.f32.mrf.mxu0 }
 0x8d5   : > { %v1224_v43 = vadd.f32 %v2080_v41, %v1223_v42 }
 0x8d6   : > { %v2286_v44 = vpop.f32.mrf.mxu0 }
 0x8d7   : > { %v1230_v45 = vadd.f32 %v1224_v43, %v1045_v25 }
 0x8d8   : > { %v1226_v46 = vpop.f32.mrf.mxu0 }
 0x8d9   : > { %v1227_v47 = vadd.f32 %v2080_v41, %v1226_v46  ;;  %v1234_v48 = vsel %vm615_vm2, %v1230_v45, 0.0 }
 0x8da   : > { %1235 = vadd.xlane.f32.xlu1 %v1234_v48  ;;  %v2287_v49 = vpop.f32.mrf.mxu0 }
 0x8db   : > { %v1231_v50 = vadd.f32 %v1227_v47, %v1046_v26 }
 0x8dd   : > { %v1237_v51 = vsel %vm615_vm2, %v1231_v50, 0.0 }
 0x8de   : > { %1238 = vadd.xlane.f32.xlu0 %v1237_v51 }
 0x963   : > { %v1236_v52 = vpop.xlane.xlu1 %1235 }
 0x964   : > { %v1240_v53 = vmul.f32 0.03125, %v1236_v52 }
 0x966   : > { %v1242_v54 = vsub.f32 %v1230_v45, %v1240_v53 }
 0x967   : > { %v1239_v55 = vpop.xlane.xlu0 %1238 }
 0x968   : > { %v1241_v56 = vmul.f32 0.03125, %v1239_v55  ;;  %v1244_v57 = vmul.f32 %v1242_v54, %v1242_v54 }
 0x96a   : > { %v1243_v58 = vsub.f32 %v1231_v50, %v1241_v56  ;;  %v1246_v59 = vsel %vm615_vm2, %v1244_v57, 0.0 }
 0x96b   : > { %1247 = vadd.xlane.f32.xlu1 %v1246_v59 }
 0x96c   : > { %v1245_v60 = vmul.f32 %v1243_v58, %v1243_v58 }
 0x96e   : > { %v1249_v61 = vsel %vm615_vm2, %v1245_v60, 0.0 }
 0x96f   : > { %1250 = vadd.xlane.f32.xlu1 %v1249_v61 }
 0x9f4   : > { %v1248_v14 = vpop.xlane.xlu1 %1247 }
 0x9f5   : > { %v1252_v0 = vmul.f32 0.03125, %v1248_v14 }
 0x9f7   : > { %v1254_v2 = vadd.f32 1e-05, %v1252_v0 }
 0x9f8   : > { %v1251_v15 = vpop.xlane.xlu1 %1250 }
 0x9f9   : > { %2481 = vrsqrt.f32 %v1254_v2  ;;  %v1253_v3 = vmul.f32 0.03125, %v1251_v15 }
 0x9fb   : > { %v1255_v4 = vadd.f32 1e-05, %v1253_v3 }
 0x9fd   : > { %2483 = vrsqrt.f32 %v1255_v4 }
 0xa06   : > { %v2482_v5 = vpop.eup %2481 }
 0xa07   : > { %v1258_v6 = vmul.f32 %v2482_v5, %v1242_v54 }
 0xa09   : > { %v1266_v10 = vmul.f32 %v2089_v7, %v1258_v6 }
 0xa0a   : > { %v2484_v8 = vpop.eup %2483 }
 0xa0b   : > { %v1259_v9 = vmul.f32 %v2484_v8, %v1243_v58  ;;  %v2888_v13 = vadd.f32 %v2090_v11, %v1266_v10 }
 0xa0d   : > { %v1267_v12 = vmul.f32 %v2089_v7, %v1259_v9 }
 0xa0f   : > { %v2890_v16 = vadd.f32 %v2090_v11, %v1267_v12 }
 0xa11   : > { %v1276_v17 = vpack.c.bf16 %v2890_v16, %v2888_v13 }
 0xa13   : > { %2293 = vmatmul.mubr.msk.bf16.vlgmr.msra.gmra.mxu1 %vm615_vm2, %v1276_v17 }
 0xa14   : > { %2298 = vmatprep.mubr.msk.bf16.mxu1 %vm2572_vm0, %v2571_v1 }
 0xad3   : > { %v1339_v19 = vpop.f32.mrf.mxu1 }
 0xad4   : > { %v1340_v21 = vadd.f32 %v2096_v18, %v1339_v19 }
 0xad5   : > { %v2294_v20 = vpop.f32.mrf.mxu1 }
 0xad6   : > { %v1346_v25 = vmul.f32 0.25, %v1340_v21 }
 0xad7   : > { %v1342_v22 = vpop.f32.mrf.mxu1 }
 0xad8   : > { %v1343_v23 = vadd.f32 %v2096_v18, %v1342_v22  ;;  %v2449_v18 = vld [vmem:[%s3058_s6 + $0x18] sm:$0xff]  }
 0xad9   : > { %v2295_v24 = vpop.f32.mrf.mxu1 }
 0xada   : > { %v1347_v26 = vmul.f32 0.25, %v1343_v23  ;;  %v2416_v27 = vpack.i.bf16 %v1343_v23, %v1340_v21  ;;  %v1366_v29 = vpack.c.bf16 %v1343_v23, %v1340_v21  ;;  %v2450_v21 = vld [vmem:[%s3058_s6 + $0x10] sm:$0xff]  }
 0xadc   : > { %v1356_v28 = vpack.c.bf16 %v1347_v26, %v1346_v25  ;;  %2417 = vrot.lane.b32.xlu1 %v2416_v27, %s2573_s20  ;;  %v2421_v30 = vpack.i.bf16 %v1347_v26, %v1346_v25 }
 0xae0   : > { %1369 = vrot.lane.b32.xlu1 %v1366_v29, %s3089_s28 }
 0xae4   : > { %2422 = vrot.lane.b32.xlu1 %v2421_v30, %s2573_s20  ;;  %s3090_s20 = smov 64  }
 0xb4e   : > { %v2418_v31 = vpop.permute.xlu1 %2417 }
 0xb4f   : > { %v2420_v32 = vunpack.i.h.bf16 %v2418_v31  ;;  %v2419_v33 = vunpack.i.l.bf16 %v2418_v31 }
 0xb51   : > { %v1367_v34 = vpack.c.bf16 %v2420_v32, %v2419_v33 }
 0xb52   : > { %v1370_v35 = vpop.permute.xlu1 %1369 }
 0xb53   : > { %v1375_v36 = vsel %vm542_vm1, %v1370_v35, 0  ;;  %1419 = vrot.lane.b32.xlu0 %v1367_v34, %s3089_s28 }
 0xb54   : > { %2297 = vmatpush3.bf16.xpose.msra.mxu1 %v1375_v36 }
 0xb55   : > { %2302 = vmatprep.subr.bf16.mxu1 %v2571_v1 }
 0xb56   : > { %v2423_v37 = vpop.permute.xlu1 %2422 }
 0xb57   : > { %v2425_v40 = vunpack.i.h.bf16 %v2423_v37  ;;  %v2424_v41 = vunpack.i.l.bf16 %v2423_v37 }
 0xb59   : > { %v1357_v42 = vpack.c.bf16 %v2425_v40, %v2424_v41 }
 0xb5b   : > { %2299 = vmatmul.mubr.msk.bf16.vlgmr.msra.gmra.mxu1 %vm542_vm1, %v1356_v28 }
 0xb5c   : > { %2304 = vmatprep.mubr.msk.bf16.mxu1 %vm2572_vm0, %v2571_v1 }
 0xbc5   : > { %v1420_v38 = vpop.permute.xlu0 %1419 }
 0xbc6   : > { %v1425_v39 = vsel %vm542_vm1, %v1420_v38, 0 }
 0xbc7   : > { %2303 = vmatpush3.bf16.xpose.msra.mxu1 %v1425_v39 }
 0xbc8   : > { %2308 = vmatprep.subr.bf16.mxu1 %v2571_v1 }
 0xbce   : > { %2305 = vmatmul.mubr.msk.bf16.vlgmr.msra.gmra.mxu1 %vm542_vm1, %v1357_v42 }
 0xbcf   : > { %2310 = vmatprep.mubr.msk.bf16.mxu1 %vm2572_vm0, %v2571_v1 }
 0xc1b   : > { %v1411_v43 = vpop.f32.mrf.mxu1 }
 0xc1c   : > { %v1468_v53 = vsel %vm542_vm1, %v1411_v43, -inf }
 0xc1d   : > { %v2300_v44 = vpop.f32.mrf.mxu1 }
 0xc1f   : > { %v1414_v45 = vpop.f32.mrf.mxu1 }
 0xc20   : > { %v1471_v54 = vsel %vm542_vm1, %v1414_v45, -inf }
 0xc21   : > { %v2301_v46 = vpop.f32.mrf.mxu1 }
 0xc8e   : > { %v1461_v47 = vpop.f32.mrf.mxu1 }
 0xc8f   : > { %v1474_v48 = vsel %vm542_vm1, %v1461_v47, -inf }
 0xc90   : > { %1475 = vmax.xlane.f32.xlu1 %v1474_v48  ;;  %v2306_v49 = vpop.f32.mrf.mxu1 }
 0xc92   : > { %v1464_v50 = vpop.f32.mrf.mxu1 }
 0xc93   : > { %v1477_v51 = vsel %vm542_vm1, %v1464_v50, -inf }
 0xc94   : > { %1478 = vmax.xlane.f32.xlu0 %v1477_v51  ;;  %v2307_v52 = vpop.f32.mrf.mxu1 }
 0xc98   : > { %1469 = vmax.xlane.f32.xlu0 %v1468_v53 }
 0xc9c   : > { %1472 = vmax.xlane.f32.xlu0 %v1471_v54 }
 0xca1   : > { %1553 = vrot.lane.b32.xlu1 %v1367_v34, %s3090_s20 }
 0xca5   : > { %1506 = vrot.lane.b32.xlu1 %v1366_v29, %s3090_s20 }
 0xd19   : > { %v1476_v55 = vpop.xlane.xlu1 %1475 }
 0xd1a   : > { %v1482_v56 = vsub.f32 %v1461_v47, %v1476_v55  ;;  %v2109_v47 = vld [vmem:[%s3059_s7 + $0x1] ss:$0 sm:$0xff] }
 0xd1c   : > { %v1488_v57 = vmul.f32 1.442695, %v1482_v56 }
 0xd1d   : > { %v1554_v58 = vpop.permute.xlu1 %1553  ;;  %v1479_v59 = vpop.xlane.xlu0 %1478 }
 0xd1e   : > { %2485 = vpow2.f32 %v1488_v57  ;;  %v1483_v60 = vsub.f32 %v1464_v50, %v1479_v59  ;;  %2315 = vmatpush3.bf16.msra.mxu0 %v1554_v58 }
 0xd1f   : > { %2328 = vmatprep.subr.bf16.mxu0 %v2571_v1 }
 0xd20   : > { %v1490_v61 = vmul.f32 1.442695, %v1483_v60 }
 0xd21   : > { %v1507_v62 = vpop.permute.xlu1 %1506  ;;  %v1470_v63 = vpop.xlane.xlu0 %1469 }
 0xd22   : > { %2487 = vpow2.f32 %v1490_v61  ;;  %v1480_v14 = vsub.f32 %v1411_v43, %v1470_v63  ;;  %2309 = vmatpush3.bf16.msra.mxu1 %v1507_v62 }
 0xd23   : > { %2320 = vmatprep.subr.bf16.mxu1 %v2571_v1 }
 0xd24   : > { %v1484_v0 = vmul.f32 1.442695, %v1480_v14 }
 0xd25   : > { %v1473_v2 = vpop.xlane.xlu0 %1472 }
 0xd26   : > { %2489 = vpow2.f32 %v1484_v0  ;;  %v1481_v15 = vsub.f32 %v1414_v45, %v1473_v2 }
 0xd28   : > { %v1486_v3 = vmul.f32 1.442695, %v1481_v15  ;;  %v2452_v15 = vld [vmem:[%s3060_s8 + $0x10] sm:$0xff]  }
 0xd2a   : > { %2491 = vpow2.f32 %v1486_v3  ;;  %v2453_v3 = vld [vmem:[%s3062_s10 + $0x78] sm:$0xff]  }
 0xd2b   : > { %v2486_v4 = vpop.eup %2485 }
 0xd2c   : > { %v1498_v5 = vsel %vm542_vm1, %v2486_v4, 0.0 }
 0xd2d   : > { %1499 = vadd.xlane.f32.xlu0 %v1498_v5  ;;  %v2455_v5 = vld [vmem:[%s3062_s10 + $0x68] sm:$0xff]  }
 0xd2f   : > { %v2488_v6 = vpop.eup %2487 }
 0xd30   : > { %v1501_v7 = vsel %vm542_vm1, %v2488_v6, 0.0  ;;  %v1505_v8 = vpack.c.bf16 %v2488_v6, %v2486_v4  ;;  %v2454_v4 = vld [vmem:[%s3062_s10 + $0x70] sm:$0xff]   ;;  %v2456_v6 = vld [vmem:[%s3062_s10 + $0x60] sm:$0xff]  }
 0xd31   : > { %1502 = vadd.xlane.f32.xlu1 %v1501_v7  ;;  %v2457_v7 = vld [vmem:[%s3062_s10 + $0x58] sm:$0xff]  }
 0xd32   : > { %2317 = vmatmul.mubr.msk.bf16.vlgmr.msra.gmra.mxu0 %vm542_vm1, %v1505_v8 }
 0xd33   : > { %v2490_v9 = vpop.eup %2489  ;;  %2332 = vmatprep.mubr.msk.bf16.mxu0 %vm2572_vm0, %v2571_v1 }
 0xd34   : > { %v1492_v10 = vsel %vm542_vm1, %v2490_v9, 0.0 }
 0xd35   : > { %1493 = vadd.xlane.f32.xlu0 %v1492_v10 }
 0xd37   : > { %v2492_v11 = vpop.eup %2491 }
 0xd38   : > { %v1495_v12 = vsel %vm542_vm1, %v2492_v11, 0.0  ;;  %v1504_v17 = vpack.c.bf16 %v2492_v11, %v2490_v9 }
 0xd39   : > { %1496 = vadd.xlane.f32.xlu0 %v1495_v12 }
 0xd3a   : > { %2311 = vmatmul.mubr.msk.bf16.vlgmr.msra.gmra.mxu1 %vm542_vm1, %v1504_v17 }
 0xd3b   : > { %2324 = vmatprep.mubr.msk.bf16.mxu1 %vm2572_vm0, %v2571_v1  ;;  %2321 = vmatpush3.bf16.msra.mxu1 %v2449_v18 }
 0xd3c   : > { %2322 = vmatprep.subr.bf16.mxu1 %v2571_v1 }
 0xd3f   : > { %2323 = vmatpush3.bf16.msra.mxu1 %v2450_v21 }
 0xd40   : > { %2336 = vmatprep.subr.bf16.mxu1 %v2571_v1 }
 0xdb6   : > { %v1500_v19 = vpop.xlane.xlu0 %1499 }
 0xdb7   : > { %2493 = vrcp.f32 %v1500_v19 }
 0xdba   : > { %v1503_v20 = vpop.xlane.xlu1 %1502 }
 0xdbb   : > { %2495 = vrcp.f32 %v1503_v20  ;;  %v2115_v20 = vld [vmem:[%s3064_s12 + $0x1] ss:$0 sm:$0xff] }
 0xdbe   : > { %v1494_v35 = vpop.xlane.xlu0 %1493 }
 0xdbf   : > { %2497 = vrcp.f32 %v1494_v35 }
 0xdc2   : > { %v1497_v36 = vpop.xlane.xlu0 %1496 }
 0xdc3   : > { %2499 = vrcp.f32 %v1497_v36 }
 0xdc4   : > { %v2494_v24 = vpop.eup %2493 }
 0xdc8   : > { %v2496_v25 = vpop.eup %2495 }
 0xdcc   : > { %v2498_v37 = vpop.eup %2497 }
 0xdd0   : > { %v2500_v38 = vpop.eup %2499 }
 0xdf2   : > { %v1593_v22 = vpop.f32.mrf.mxu0 }
 0xdf3   : > { %v1606_v27 = vmul.f32 %v2494_v24, %v1593_v22  ;;  %v2116_v24 = vld [vmem:[%s3065_s13 + $0x1] ss:$0 sm:$0xff] }
 0xdf4   : > { %v2318_v23 = vpop.f32.mrf.mxu0 }
 0xdf6   : > { %v1596_v26 = vpop.f32.mrf.mxu0 }
 0xdf7   : > { %v1607_v28 = vmul.f32 %v2496_v25, %v1596_v26 }
 0xdf8   : > { %v2319_v29 = vpop.f32.mrf.mxu0 }
 0xdf9   : > { %v2426_v30 = vpack.i.bf16 %v1607_v28, %v1606_v27  ;;  %v2458_v29 = vld [vmem:[%s3062_s10 + $0x50] sm:$0xff]  }
 0xdfa   : > { %v1546_v31 = vpop.f32.mrf.mxu1 }
 0xdfb   : > { %2427 = vrot.lane.b32.xlu0 %v2426_v30, %s3091_s19  ;;  %v1604_v40 = vmul.f32 %v2498_v37, %v1546_v31  ;;  %v2459_v30 = vld [vmem:[%s3062_s10 + $0x48] sm:$0xff]   ;;  %v2460_v31 = vld [vmem:[%s3062_s10 + $0x40] sm:$0xff]   ;;  %s2156_s19 = sshll.u32 %s2684_s25, 4  ;;  %s2515_s25 = scalar_lea.vmem %s2514_s3, 32 }
 0xdfc   : > { %v2312_v32 = vpop.f32.mrf.mxu1  ;;  %s1995_s29 = scalar_lea.hbm %s3068_s16, %s2156_s19  ;;  %p2517_p1 = scmp.lt.s32.totalorder %s2515_s25, %s2509_s30 }
 0xdfd   : > { %v2122_v32 = vld [vmem:[%s3061_s9 + $0x1] ss:$0 sm:$0xff] }
 0xdfe   : > { %v1549_v33 = vpop.f32.mrf.mxu1  ;;  %p2518_p2 = por %p2517_p1, %p2516_p0 }
 0xdff   : > { %v1605_v41 = vmul.f32 %v2500_v38, %v1549_v33 }
 0xe00   : > { %v2313_v34 = vpop.f32.mrf.mxu1  ;;  %p2519_p3 = pnand %p2518_p2, %p2512_p13 }
 0xe6d   : > { %v2428_v39 = vpop.permute.xlu0 %2427 }
 0xe6e   : > { %v2430_v42 = vunpack.i.h.bf16 %v2428_v39  ;;  %v2429_v43 = vunpack.i.l.bf16 %v2428_v39 }
 0xe70   : > { %v1617_v44 = vsel %vm542_vm1, %v1605_v41, %v2430_v42  ;;  %v1616_v45 = vsel %vm542_vm1, %v1604_v40, %v2429_v43 }
 0xe71   : > { %v1618_v46 = vpack.c.bf16 %v1617_v44, %v1616_v45 }
 0xe73   : > { %2325 = vmatmul.mubr.msk.bf16.vlgmr.msra.gmra.mxu1 %vm615_vm2, %v1618_v46 }
 0xe74   : > { %2352 = vmatprep.mubr.msk.bf16.mxu1 %vm2572_vm0, %v2571_v1  ;;  %2337 = vmatpush3.bf16.msra.mxu1 %v2453_v3 }
 0xe75   : > { %2338 = vmatprep.subr.bf16.mxu1 %v2571_v1 }
 0xe78   : > { %2339 = vmatpush3.bf16.msra.mxu1 %v2454_v4 }
 0xe79   : > { %2340 = vmatprep.subr.bf16.mxu1 %v2571_v1 }
 0xe7c   : > { %2341 = vmatpush3.bf16.msra.mxu1 %v2455_v5 }
 0xe7d   : > { %2342 = vmatprep.subr.bf16.mxu1 %v2571_v1 }
 0xe80   : > { %2343 = vmatpush3.bf16.msra.mxu1 %v2456_v6  ;;  %v2155_v6 = vld [vmem:[%s3067_s15 + $0x1] ss:$0 sm:$0xff] }
 0xe81   : > { %2344 = vmatprep.subr.bf16.mxu1 %v2571_v1 }
 0xe84   : > { %2345 = vmatpush3.bf16.msra.mxu1 %v2457_v7 }
 0xe85   : > { %2346 = vmatprep.subr.bf16.mxu1 %v2571_v1 }
 0xe88   : > { %2347 = vmatpush3.bf16.msra.mxu1 %v2458_v29 }
 0xe89   : > { %2348 = vmatprep.subr.bf16.mxu1 %v2571_v1 }
 0xe8c   : > { %2349 = vmatpush3.bf16.msra.mxu1 %v2459_v30 }
 0xe8d   : > { %2350 = vmatprep.subr.bf16.mxu1 %v2571_v1 }
 0xe90   : > { %2351 = vmatpush3.bf16.msra.mxu1 %v2460_v31 }
 0xf33   : > { %v1681_v48 = vpop.f32.mrf.mxu1 }
 0xf34   : > { %v1682_v49 = vadd.f32 %v2109_v47, %v1681_v48 }
 0xf35   : > { %v2326_v50 = vpop.f32.mrf.mxu1 }
 0xf36   : > { %v1688_v51 = vadd.f32 %v1682_v49, %v2888_v13 }
 0xf37   : > { %v1684_v52 = vpop.f32.mrf.mxu1 }
 0xf38   : > { %v1685_v53 = vadd.f32 %v2109_v47, %v1684_v52  ;;  %v1694_v54 = vsel %vm615_vm2, %v1688_v51, 0.0 }
 0xf39   : > { %1695 = vadd.xlane.f32.xlu0 %v1694_v54  ;;  %v2327_v55 = vpop.f32.mrf.mxu1 }
 0xf3a   : > { %v1689_v56 = vadd.f32 %v1685_v53, %v2890_v16  ;;  %v2451_v16 = vld [vmem:[%s3060_s8 + $0x18] sm:$0xff]  }
 0xf3b   : > { %2329 = vmatpush3.bf16.msra.mxu0 %v2451_v16 }
 0xf3c   : > { %v1697_v57 = vsel %vm615_vm2, %v1689_v56, 0.0  ;;  %2330 = vmatprep.subr.bf16.mxu0 %v2571_v1  ;;  %v2143_v1 = vld [vmem:[%s3063_s11 + $0x1] ss:$0 sm:$0xff] }
 0xf3d   : > { %1698 = vadd.xlane.f32.xlu1 %v1697_v57 }
 0xf3f   : > { %2331 = vmatpush3.bf16.msra.mxu0 %v2452_v15  ;;  %v2154_v15 = vld [vmem:[%s3066_s14 + $0x1] ss:$0 sm:$0xff] }
 0xfc2   : > { %v1696_v58 = vpop.xlane.xlu0 %1695 }
 0xfc3   : > { %v1700_v59 = vmul.f32 0.03125, %v1696_v58 }
 0xfc5   : > { %v1702_v60 = vsub.f32 %v1688_v51, %v1700_v59 }
 0xfc6   : > { %v1699_v61 = vpop.xlane.xlu1 %1698 }
 0xfc7   : > { %v1701_v62 = vmul.f32 0.03125, %v1699_v61  ;;  %v1704_v63 = vmul.f32 %v1702_v60, %v1702_v60 }
 0xfc9   : > { %v1703_v14 = vsub.f32 %v1689_v56, %v1701_v62  ;;  %v1706_v13 = vsel %vm615_vm2, %v1704_v63, 0.0 }
 0xfca   : > { %1707 = vadd.xlane.f32.xlu1 %v1706_v13 }
 0xfcb   : > { %v1705_v0 = vmul.f32 %v1703_v14, %v1703_v14 }
 0xfcd   : > { %v1709_v2 = vsel %vm615_vm2, %v1705_v0, 0.0 }
 0xfce   : > { %1710 = vadd.xlane.f32.xlu1 %v1709_v2 }
0x1053   : > { %v1708_v8 = vpop.xlane.xlu1 %1707 }
0x1054   : > { %v1712_v9 = vmul.f32 0.03125, %v1708_v8 }
0x1056   : > { %v1714_v10 = vadd.f32 1e-05, %v1712_v9 }
0x1057   : > { %v1711_v11 = vpop.xlane.xlu1 %1710 }
0x1058   : > { %2501 = vrsqrt.f32 %v1714_v10  ;;  %v1713_v12 = vmul.f32 0.03125, %v1711_v11 }
0x105a   : > { %v1715_v17 = vadd.f32 1e-05, %v1713_v12 }
0x105c   : > { %2503 = vrsqrt.f32 %v1715_v17 }
0x1065   : > { %v2502_v18 = vpop.eup %2501 }
0x1066   : > { %v1718_v19 = vmul.f32 %v2502_v18, %v1702_v60 }
0x1068   : > { %v1726_v23 = vmul.f32 %v2115_v20, %v1718_v19 }
0x1069   : > { %v2504_v21 = vpop.eup %2503 }
0x106a   : > { %v1719_v22 = vmul.f32 %v2504_v21, %v1703_v14  ;;  %v1734_v26 = vadd.f32 %v2116_v24, %v1726_v23 }
0x106c   : > { %v1727_v25 = vmul.f32 %v2115_v20, %v1719_v22 }
0x106e   : > { %v1735_v27 = vadd.f32 %v2116_v24, %v1727_v25 }
0x1070   : > { %v1736_v28 = vpack.c.bf16 %v1735_v27, %v1734_v26 }
0x1072   : > { %2333 = vmatmul.mubr.msk.bf16.vlgmr.msra.gmra.mxu0 %vm615_vm2, %v1736_v28 }
0x1132   : > { %v1799_v33 = vpop.f32.mrf.mxu0 }
0x1133   : > { %v1800_v35 = vadd.f32 %v2122_v32, %v1799_v33 }
0x1134   : > { %v2334_v34 = vpop.f32.mrf.mxu0 }
0x1135   : > { %v1806_v39 = vmax.f32 %v1800_v35, 0.0 }
0x1136   : > { %v1802_v36 = vpop.f32.mrf.mxu0 }
0x1137   : > { %v1803_v37 = vadd.f32 %v2122_v32, %v1802_v36 }
0x1138   : > { %v2335_v38 = vpop.f32.mrf.mxu0 }
0x1139   : > { %v1807_v40 = vmax.f32 %v1803_v37, 0.0 }
0x113b   : > { %v1808_v41 = vpack.c.bf16 %v1807_v40, %v1806_v39 }
0x113d   : > { %2353 = vmatmul.mubr.bf16.vlgmr.msra.gmra.mxu1 %v1808_v41 }
0x11fd   : > { %v1916_v42 = vpop.f32.mrf.mxu1 }
0x11fe   : > { %v1917_v43 = vadd.f32 %v2143_v1, %v1916_v42 }
0x11ff   : > { %v2354_v44 = vpop.f32.mrf.mxu1 }
0x1200   : > { %v1923_v45 = vadd.f32 %v1917_v43, %v1734_v26 }
0x1201   : > { %v1919_v46 = vpop.f32.mrf.mxu1 }
0x1202   : > { %v1920_v47 = vadd.f32 %v2143_v1, %v1919_v46  ;;  %v1929_v48 = vsel %vm615_vm2, %v1923_v45, 0.0 }
0x1203   : > { %1930 = vadd.xlane.f32.xlu1 %v1929_v48  ;;  %v2355_v49 = vpop.f32.mrf.mxu1 }
0x1204   : > { %v1924_v50 = vadd.f32 %v1920_v47, %v1735_v27 }
0x1206   : > { %v1932_v51 = vsel %vm615_vm2, %v1924_v50, 0.0 }
0x1207   : > { %1933 = vadd.xlane.f32.xlu1 %v1932_v51 }
0x128c   : > { %v1931_v52 = vpop.xlane.xlu1 %1930 }
0x128d   : > { %v1935_v53 = vmul.f32 0.03125, %v1931_v52 }
0x128f   : > { %v1937_v54 = vsub.f32 %v1923_v45, %v1935_v53 }
0x1290   : > { %v1934_v55 = vpop.xlane.xlu1 %1933 }
0x1291   : > { %v1936_v56 = vmul.f32 0.03125, %v1934_v55  ;;  %v1939_v57 = vmul.f32 %v1937_v54, %v1937_v54 }
0x1293   : > { %v1938_v58 = vsub.f32 %v1924_v50, %v1936_v56  ;;  %v1941_v59 = vsel %vm615_vm2, %v1939_v57, 0.0 }
0x1294   : > { %1942 = vadd.xlane.f32.xlu1 %v1941_v59 }
0x1295   : > { %v1940_v60 = vmul.f32 %v1938_v58, %v1938_v58 }
0x1297   : > { %v1944_v61 = vsel %vm615_vm2, %v1940_v60, 0.0 }
0x1298   : > { %1945 = vadd.xlane.f32.xlu1 %v1944_v61 }
0x131d   : > { %v1943_v62 = vpop.xlane.xlu1 %1942 }
0x131e   : > { %v1947_v63 = vmul.f32 0.03125, %v1943_v62 }
0x1320   : > { %v1949_v14 = vadd.f32 1e-05, %v1947_v63 }
0x1321   : > { %v1946_v13 = vpop.xlane.xlu1 %1945 }
0x1322   : > { %2505 = vrsqrt.f32 %v1949_v14  ;;  %v1948_v0 = vmul.f32 0.03125, %v1946_v13 }
0x1324   : > { %v1950_v2 = vadd.f32 1e-05, %v1948_v0 }
0x1326   : > { %2507 = vrsqrt.f32 %v1950_v2 }
0x132f   : > { %v2506_v16 = vpop.eup %2505 }
0x1330   : > { %v1953_v3 = vmul.f32 %v2506_v16, %v1937_v54 }
0x1332   : > { %v1961_v4 = vmul.f32 %v2154_v15, %v1953_v3 }
0x1333   : > { %v2508_v5 = vpop.eup %2507 }
0x1334   : > { %v1954_v7 = vmul.f32 %v2508_v5, %v1938_v58  ;;  %v1969_v9 = vadd.f32 %v2155_v6, %v1961_v4 }
0x1336   : > { %v1962_v8 = vmul.f32 %v2154_v15, %v1954_v7  ;;  %v1971_v11 = vsel %vm615_vm2, %v1969_v9, 0.0 }
0x1338   : > { %v1970_v10 = vadd.f32 %v2155_v6, %v1962_v8 }
0x133a   : > { %v1972_v12 = vsel %vm615_vm2, %v1970_v10, 0.0 }
0x133b   : > { %v1973_v17 = vadd.f32 %v1972_v12, %v1971_v11 }
0x133d   : > { %v1974_v18 = vrot.slane %v1973_v17, 4 }
0x133f   : > { %v1975_v19 = vadd.f32 %v1974_v18, %v1973_v17 }
0x1341   : > { %v1976_v20 = vrot.slane %v1975_v19, 2 }
0x1343   : > { %v1977_v21 = vadd.f32 %v1976_v20, %v1975_v19 }
0x1345   : > { %v1978_v22 = vrot.slane %v1977_v21, 1 }
0x1347   : > { %v1979_v23 = vadd.f32 %v1978_v22, %v1977_v21 }
0x1349   : > { %v1981_v24 = vmul.f32 0.0625, %v1979_v23 }
0x134b   : > { %1983 = vst.msk [vmem:[%s513_s23] sm:$0x1] %vm1982_vm3, %v1981_v24 }
0x134c   : > { %2522 = shalt.err (!%p2519_p3)
}
0x134d   : > { %s2523_s4 = scalar_lea.hbm %s1995_s29, 16  ;;  %s2527_s23 = scalar_lea.hbm %s3068_s16, 32 }
0x134e   : > { %p2524_p4 = scmp.ne.s32.totalorder %s1995_s29, %s2523_s4  ;;  %p2528_p9 = scmp.lt.s32.totalorder %s1995_s29, %s3068_s16 }
0x134f   : > { %p2529_p10 = scmp.lt.s32.totalorder %s2527_s23, %s2523_s4 }
0x1350   : > { %p2525_p7 = pnand %p2524_p4, %p2701_p5 }
0x1351   : > { %p2530_p11 = por %p2529_p10, %p2528_p9 }
0x1352   : > { %p2526_p8 = pneg %p2525_p7 }
0x1354   : > { %p2531_p12 = pnand %p2530_p11, %p2526_p8 }
0x1356   : > { %2534 = shalt.err (!%p2531_p12)
}
0x1357   : > { %2356 = dma.vmem_to_hbm [thread:$0]  (%p2701_p5), %s1998_s26, 16, %s1995_s29, %s1985_s2  }
0x1358 PF: > { %p2362_p13 = scmp.ge.s32.totalorder %s2569_s24, 2  ;;  %s2009_s1 = sand.u32 1, %s2557_s21  }
0x1359   : > { %s2010_s3 = scalar_lea.sflag [#allocation3], %s2009_s1 }
0x135a   : > { %p2359_p0 = pnand %p2362_p13, %p2705_p6 }
0x135c   : > { %p2360_p1 = pneg %p2359_p0 }
0x135e   : > { %2552 = dma.done.wait (%p2360_p1), %s2010_s3, 16  }
0x135f   : > { %2554 = vsyncadd (%p2360_p1), %s2010_s3, 4294967280  ;;  %s3092_s4 = sld [smem:[#allocation5_spill]]  ;;  %p26_p2 = scmp.ge.s32.totalorder %s2688_s27, 4  }
0x1360   : > { %s3093_s23 = sld [smem:[#allocation6_spill]]  ;;  %s3094_s21 = smov %s2561_s22 }
0x1361   : > { %s3096_s24 = smov %s2688_s27  ;;  %28 = sbr.rel (!%p26_p2) target bundleno = 9 (0x9), region = 131 }
0x1365   : > { %s3095_s22 = smov %s3092_s4 }
0x1366   :  { %2014 = vsyncpa [#allocation3], 1 }
0x1367   :  { %2016 = vsyncpa [#allocation3 + $0x1], 1 }

</bundles_post_ra>
